<compile_context>
chip_gen: v7x
topology: tpu7x:2x2x1
jax: 0.10.0
libtpu: 0.0.40
codegen_flags: <defaults>
</compile_context>

<pallas_src>
import functools
import math

import jax
import jax.numpy as jnp
from jax import lax
from jax.experimental import pallas as pl
from jax.experimental.pallas import tpu as pltpu


def _conv_kernel(x_ref, w_ref, b_ref, o_ref, patches_ref, *, B, KH, KW, Cin,
                 H, W, H_out, W_out, stride, padding, dilation, K):
    """In-kernel im2col + one MXU matmul per image; (Cout, M) output block.

    x_ref:       (B, H, W, Cin)          unpadded NHWC images (VMEM)
    w_ref:       (Cout, K)               weight matrix, K = KH*KW*Cin
    b_ref:       (Cout, 1)               bias column
    o_ref:       (B, Cout, H_out*W_out)  lane-dense output block
    patches_ref: (B, H_out, W_out, K)    im2col scratch (VMEM)
    """
    M = H_out * W_out

    # Zero fill supplies the implicit conv zero-padding for border outputs;
    # every interior position is overwritten by the tap scatter below.
    patches_ref[...] = jnp.zeros(patches_ref.shape, patches_ref.dtype)

    for b in range(B):
        # Scatter the KH*KW taps into the im2col scratch.  All window bounds
        # are static Python ints; positions reading outside the image stay 0.
        for kh in range(KH):
            for kw in range(KW):
                h_lo = max(0, -(-(padding - kh * dilation) // stride))
                h_hi = min(H_out - 1,
                           (H - 1 + padding - kh * dilation) // stride)
                w_lo = max(0, -(-(padding - kw * dilation) // stride))
                w_hi = min(W_out - 1,
                           (W - 1 + padding - kw * dilation) // stride)
                nh = h_hi - h_lo + 1
                nw = w_hi - w_lo + 1
                if nh <= 0 or nw <= 0:
                    continue  # tap only ever reads padding -> contributes 0
                rs = h_lo * stride + kh * dilation - padding  # >= 0
                cs = w_lo * stride + kw * dilation - padding  # >= 0
                t = kh * KW + kw
                if stride == 1:
                    xs = x_ref[b, rs:rs + nh, cs:cs + nw, :]
                else:
                    # TODO(synk): strided sublane reads are the slow path;
                    # replace with dense read + XLU select if stride>1 is used.
                    xs = x_ref[b, pl.ds(rs, nh, stride),
                               pl.ds(cs, nw, stride), :]
                patches_ref[b, h_lo:h_lo + nh, w_lo:w_lo + nw,
                            t * Cin:(t + 1) * Cin] = xs

        # (Cout, K) x (M, K)^T -> (Cout, M) on the MXU, f32 accumulation.
        # No epilogue transpose: M sits on the output lane axis, Cout on
        # sublanes, so the store to o_ref is an unmasked lane-dense vst.
        p2 = patches_ref[b].reshape(M, K)
        acc = lax.dot_general(
            w_ref[...], p2,
            dimension_numbers=(((1,), (1,)), ((), ())),
            preferred_element_type=jnp.float32)            # (Cout, M)
        o_ref[b] = (acc + b_ref[...]).astype(o_ref.dtype)


def conv_layer_forward(x_nchw, weight, bias, *, stride=1, padding=1,
                       dilation=1, images_per_step=None):
    """Forward pass of ConvLayer (== nn.Conv2d) with NCHW I/O."""
    N, Cin, H, W = x_nchw.shape
    Cout, Cin_w, KH, KW = weight.shape
    assert Cin == Cin_w

    H_out = (H + 2 * padding - dilation * (KH - 1) - 1) // stride + 1
    W_out = (W + 2 * padding - dilation * (KW - 1) - 1) // stride + 1
    M = H_out * W_out
    K = KH * KW * Cin          # real contraction length (Mosaic pads lanes)

    B = 1 if images_per_step is None else int(images_per_step)
    assert B >= 1 and N % B == 0, "images_per_step must divide the batch"

    # Glue: one layout change for activations (channels onto the MXU K axis).
    x_nhwc = jnp.transpose(x_nchw, (0, 2, 3, 1))
    # Weight matrix (Cout, K) with K ordered (kh, kw, ci), matching im2col.
    w_mat = jnp.transpose(weight, (0, 2, 3, 1)).reshape(Cout, K)
    b_col = bias.reshape(Cout, 1).astype(w_mat.dtype)

    kernel = functools.partial(
        _conv_kernel, B=B, KH=KH, KW=KW, Cin=Cin, H=H, W=W,
        H_out=H_out, W_out=W_out, stride=stride, padding=padding,
        dilation=dilation, K=K)

    out = pl.pallas_call(
        kernel,
        out_shape=jax.ShapeDtypeStruct((N, Cout, M), x_nchw.dtype),
        grid_spec=pltpu.PrefetchScalarGridSpec(
            num_scalar_prefetch=0,
            grid=(N // B,),
            in_specs=[
                pl.BlockSpec((B, H, W, Cin), lambda n: (n, 0, 0, 0)),
                pl.BlockSpec((Cout, K), lambda n: (0, 0)),   # weights resident
                pl.BlockSpec((Cout, 1), lambda n: (0, 0)),   # bias resident
            ],
            out_specs=pl.BlockSpec((B, Cout, M), lambda n: (n, 0, 0)),
            scratch_shapes=[pltpu.VMEM((B, H_out, W_out, K), x_nchw.dtype)],
        ),
        compiler_params=pltpu.CompilerParams(
            dimension_semantics=("parallel",)),
    )(x_nhwc, w_mat, b_col)

    # (N, Cout, H_out*W_out) -> (N, Cout, H_out, W_out): trailing-dim reshape,
    # already NCHW (no output transpose needed).
    return out.reshape(N, Cout, H_out, W_out)


if __name__ == "__main__":
    # ConvLayer(in_channels=4, out_channels=8, kernel_size=3, stride=1, padding=1)
    N, Cin, H, W = 2, 4, 16, 16
    Cout, Ksz = 8, 3
    stride, padding, dilation = 1, 1, 1

    key = jax.random.PRNGKey(0)
    kx, kw, kb = jax.random.split(key, 3)

    x = jax.random.normal(kx, (N, Cin, H, W), dtype=jnp.float32)

    # Deterministic Conv2d-style (kaiming-uniform-ish) init.
    fan_in = Cin * Ksz * Ksz
    bound = 1.0 / math.sqrt(fan_in)
    weight = jax.random.uniform(kw, (Cout, Cin, Ksz, Ksz), jnp.float32,
                                minval=-bound, maxval=bound)
    bias = jax.random.uniform(kb, (Cout,), jnp.float32,
                              minval=-bound, maxval=bound)

    # Reference: XLA conv + bias.
    ref = jax.lax.conv_general_dilated(
        x, weight, window_strides=(stride, stride),
        padding=[(padding, padding), (padding, padding)],
        rhs_dilation=(dilation, dilation),
        dimension_numbers=("NCHW", "OIHW", "NCHW"))
    ref = ref + bias[None, :, None, None]

    # Default: one image per grid step (2 parallel steps -> both v7x TCs).
    out1 = jax.block_until_ready(
        conv_layer_forward(x, weight, bias, stride=stride, padding=padding,
                           dilation=dilation))
    assert out1.shape == (N, Cout, H, W), out1.shape
    assert jnp.allclose(out1, ref, atol=1e-3, rtol=1e-3), \
        float(jnp.max(jnp.abs(out1 - ref)))

    # Batched variant: both images in a single grid step (step-overhead
    # amortization path from the perf review).
    out2 = jax.block_until_ready(
        conv_layer_forward(x, weight, bias, stride=stride, padding=padding,
                           dilation=dilation, images_per_step=2))
    assert jnp.allclose(out2, ref, atol=1e-3, rtol=1e-3), \
        float(jnp.max(jnp.abs(out2 - ref)))

    print("KERNEL_OK")
</pallas_src>

<mosaic_0001>
module attributes {stable_mosaic.version = 11 : i64} {
  func.func @_conv_kernel(%arg0: i32, %arg1: memref<1x16x16x4xf32, #tpu.memory_space<vmem>>, %arg2: memref<8x36xf32, #tpu.memory_space<vmem>>, %arg3: memref<8x1xf32, #tpu.memory_space<vmem>>, %arg4: memref<1x8x256xf32, #tpu.memory_space<vmem>>, %arg5: memref<1x16x16x36xf32, #tpu.memory_space<vmem>>) attributes {dimension_semantics = [#tpu.dimension_semantics<parallel>], iteration_bounds = array<i64: 2>, scalar_prefetch = 0 : i64, scratch_operands = 1 : i64, tpu.core_type = #tpu.core_type<tc>, window_params = [{transform_indices = @transform_0, window_bounds = array<i64: 1, 16, 16, 4>}, {pipeline_mode = #tpu.pipeline_mode<synchronous>, transform_indices = @transform_1, window_bounds = array<i64: 8, 36>}, {pipeline_mode = #tpu.pipeline_mode<synchronous>, transform_indices = @transform_2, window_bounds = array<i64: 8, 1>}, {transform_indices = @transform_3, window_bounds = array<i64: 1, 8, 256>}]} {
    %cst = arith.constant 0.000000e+00 : f32
    %0 = vector.broadcast %cst : f32 to vector<1x16x16x36xf32>
    %c0 = arith.constant 0 : index
    %c0_0 = arith.constant 0 : index
    %c0_1 = arith.constant 0 : index
    %c0_2 = arith.constant 0 : index
    %1 = vector.load %arg5[%c0, %c0_0, %c0_1, %c0_2] : memref<1x16x16x36xf32, #tpu.memory_space<vmem>>, vector<1x16x16x36xf32>
    tpu.vector_store %arg5[%c0, %c0_0, %c0_1, %c0_2], %0 {strides = array<i32>} : memref<1x16x16x36xf32, #tpu.memory_space<vmem>>, vector<1x16x16x36xf32>,
    %c0_3 = arith.constant 0 : index
    %c0_4 = arith.constant 0 : index
    %c0_5 = arith.constant 0 : index
    %c0_6 = arith.constant 0 : index
    %2 = vector.load %arg1[%c0_3, %c0_4, %c0_5, %c0_6] : memref<1x16x16x4xf32, #tpu.memory_space<vmem>>, vector<1x15x15x4xf32>
    %3 = vector.shape_cast %2 : vector<1x15x15x4xf32> to vector<15x15x4xf32>
    %c0_7 = arith.constant 0 : index
    %c1 = arith.constant 1 : index
    %c1_8 = arith.constant 1 : index
    %c0_9 = arith.constant 0 : index
    %4 = vector.load %arg5[%c0_7, %c1, %c1_8, %c0_9] : memref<1x16x16x36xf32, #tpu.memory_space<vmem>>, vector<1x15x15x4xf32>
    %5 = vector.shape_cast %4 : vector<1x15x15x4xf32> to vector<15x15x4xf32>
    %6 = vector.shape_cast %3 : vector<15x15x4xf32> to vector<1x15x15x4xf32>
    tpu.vector_store %arg5[%c0_7, %c1, %c1_8, %c0_9], %6 {strides = array<i32>} : memref<1x16x16x36xf32, #tpu.memory_space<vmem>>, vector<1x15x15x4xf32>,
    %c0_10 = arith.constant 0 : index
    %c0_11 = arith.constant 0 : index
    %c0_12 = arith.constant 0 : index
    %c0_13 = arith.constant 0 : index
    %7 = vector.load %arg1[%c0_10, %c0_11, %c0_12, %c0_13] : memref<1x16x16x4xf32, #tpu.memory_space<vmem>>, vector<1x15x16x4xf32>
    %8 = vector.shape_cast %7 : vector<1x15x16x4xf32> to vector<15x16x4xf32>
    %c0_14 = arith.constant 0 : index
    %c1_15 = arith.constant 1 : index
    %c0_16 = arith.constant 0 : index
    %c4 = arith.constant 4 : index
    %9 = vector.load %arg5[%c0_14, %c1_15, %c0_16, %c4] : memref<1x16x16x36xf32, #tpu.memory_space<vmem>>, vector<1x15x16x4xf32>
    %10 = vector.shape_cast %9 : vector<1x15x16x4xf32> to vector<15x16x4xf32>
    %11 = vector.shape_cast %8 : vector<15x16x4xf32> to vector<1x15x16x4xf32>
    tpu.vector_store %arg5[%c0_14, %c1_15, %c0_16, %c4], %11 {strides = array<i32>} : memref<1x16x16x36xf32, #tpu.memory_space<vmem>>, vector<1x15x16x4xf32>,
    %c0_17 = arith.constant 0 : index
    %c0_18 = arith.constant 0 : index
    %c1_19 = arith.constant 1 : index
    %c0_20 = arith.constant 0 : index
    %12 = vector.load %arg1[%c0_17, %c0_18, %c1_19, %c0_20] : memref<1x16x16x4xf32, #tpu.memory_space<vmem>>, vector<1x15x15x4xf32>
    %13 = vector.shape_cast %12 : vector<1x15x15x4xf32> to vector<15x15x4xf32>
    %c0_21 = arith.constant 0 : index
    %c1_22 = arith.constant 1 : index
    %c0_23 = arith.constant 0 : index
    %c8 = arith.constant 8 : index
    %14 = vector.load %arg5[%c0_21, %c1_22, %c0_23, %c8] : memref<1x16x16x36xf32, #tpu.memory_space<vmem>>, vector<1x15x15x4xf32>
    %15 = vector.shape_cast %14 : vector<1x15x15x4xf32> to vector<15x15x4xf32>
    %16 = vector.shape_cast %13 : vector<15x15x4xf32> to vector<1x15x15x4xf32>
    tpu.vector_store %arg5[%c0_21, %c1_22, %c0_23, %c8], %16 {strides = array<i32>} : memref<1x16x16x36xf32, #tpu.memory_space<vmem>>, vector<1x15x15x4xf32>,
    %c0_24 = arith.constant 0 : index
    %c0_25 = arith.constant 0 : index
    %c0_26 = arith.constant 0 : index
    %c0_27 = arith.constant 0 : index
    %17 = vector.load %arg1[%c0_24, %c0_25, %c0_26, %c0_27] : memref<1x16x16x4xf32, #tpu.memory_space<vmem>>, vector<1x16x15x4xf32>
    %18 = vector.shape_cast %17 : vector<1x16x15x4xf32> to vector<16x15x4xf32>
    %c0_28 = arith.constant 0 : index
    %c0_29 = arith.constant 0 : index
    %c1_30 = arith.constant 1 : index
    %c12 = arith.constant 12 : index
    %19 = vector.load %arg5[%c0_28, %c0_29, %c1_30, %c12] : memref<1x16x16x36xf32, #tpu.memory_space<vmem>>, vector<1x16x15x4xf32>
    %20 = vector.shape_cast %19 : vector<1x16x15x4xf32> to vector<16x15x4xf32>
    %21 = vector.shape_cast %18 : vector<16x15x4xf32> to vector<1x16x15x4xf32>
    tpu.vector_store %arg5[%c0_28, %c0_29, %c1_30, %c12], %21 {strides = array<i32>} : memref<1x16x16x36xf32, #tpu.memory_space<vmem>>, vector<1x16x15x4xf32>,
    %c0_31 = arith.constant 0 : index
    %c0_32 = arith.constant 0 : index
    %c0_33 = arith.constant 0 : index
    %c0_34 = arith.constant 0 : index
    %22 = vector.load %arg1[%c0_31, %c0_32, %c0_33, %c0_34] : memref<1x16x16x4xf32, #tpu.memory_space<vmem>>, vector<1x16x16x4xf32>
    %23 = vector.shape_cast %22 : vector<1x16x16x4xf32> to vector<16x16x4xf32>
    %c0_35 = arith.constant 0 : index
    %c0_36 = arith.constant 0 : index
    %c0_37 = arith.constant 0 : index
    %c16 = arith.constant 16 : index
    %24 = vector.load %arg5[%c0_35, %c0_36, %c0_37, %c16] : memref<1x16x16x36xf32, #tpu.memory_space<vmem>>, vector<1x16x16x4xf32>
    %25 = vector.shape_cast %24 : vector<1x16x16x4xf32> to vector<16x16x4xf32>
    %26 = vector.shape_cast %23 : vector<16x16x4xf32> to vector<1x16x16x4xf32>
    tpu.vector_store %arg5[%c0_35, %c0_36, %c0_37, %c16], %26 {strides = array<i32>} : memref<1x16x16x36xf32, #tpu.memory_space<vmem>>, vector<1x16x16x4xf32>,
    %c0_38 = arith.constant 0 : index
    %c0_39 = arith.constant 0 : index
    %c1_40 = arith.constant 1 : index
    %c0_41 = arith.constant 0 : index
    %27 = vector.load %arg1[%c0_38, %c0_39, %c1_40, %c0_41] : memref<1x16x16x4xf32, #tpu.memory_space<vmem>>, vector<1x16x15x4xf32>
    %28 = vector.shape_cast %27 : vector<1x16x15x4xf32> to vector<16x15x4xf32>
    %c0_42 = arith.constant 0 : index
    %c0_43 = arith.constant 0 : index
    %c0_44 = arith.constant 0 : index
    %c20 = arith.constant 20 : index
    %29 = vector.load %arg5[%c0_42, %c0_43, %c0_44, %c20] : memref<1x16x16x36xf32, #tpu.memory_space<vmem>>, vector<1x16x15x4xf32>
    %30 = vector.shape_cast %29 : vector<1x16x15x4xf32> to vector<16x15x4xf32>
    %31 = vector.shape_cast %28 : vector<16x15x4xf32> to vector<1x16x15x4xf32>
    tpu.vector_store %arg5[%c0_42, %c0_43, %c0_44, %c20], %31 {strides = array<i32>} : memref<1x16x16x36xf32, #tpu.memory_space<vmem>>, vector<1x16x15x4xf32>,
    %c0_45 = arith.constant 0 : index
    %c1_46 = arith.constant 1 : index
    %c0_47 = arith.constant 0 : index
    %c0_48 = arith.constant 0 : index
    %32 = vector.load %arg1[%c0_45, %c1_46, %c0_47, %c0_48] : memref<1x16x16x4xf32, #tpu.memory_space<vmem>>, vector<1x15x15x4xf32>
    %33 = vector.shape_cast %32 : vector<1x15x15x4xf32> to vector<15x15x4xf32>
    %c0_49 = arith.constant 0 : index
    %c0_50 = arith.constant 0 : index
    %c1_51 = arith.constant 1 : index
    %c24 = arith.constant 24 : index
    %34 = vector.load %arg5[%c0_49, %c0_50, %c1_51, %c24] : memref<1x16x16x36xf32, #tpu.memory_space<vmem>>, vector<1x15x15x4xf32>
    %35 = vector.shape_cast %34 : vector<1x15x15x4xf32> to vector<15x15x4xf32>
    %36 = vector.shape_cast %33 : vector<15x15x4xf32> to vector<1x15x15x4xf32>
    tpu.vector_store %arg5[%c0_49, %c0_50, %c1_51, %c24], %36 {strides = array<i32>} : memref<1x16x16x36xf32, #tpu.memory_space<vmem>>, vector<1x15x15x4xf32>,
    %c0_52 = arith.constant 0 : index
    %c1_53 = arith.constant 1 : index
    %c0_54 = arith.constant 0 : index
    %c0_55 = arith.constant 0 : index
    %37 = vector.load %arg1[%c0_52, %c1_53, %c0_54, %c0_55] : memref<1x16x16x4xf32, #tpu.memory_space<vmem>>, vector<1x15x16x4xf32>
    %38 = vector.shape_cast %37 : vector<1x15x16x4xf32> to vector<15x16x4xf32>
    %c0_56 = arith.constant 0 : index
    %c0_57 = arith.constant 0 : index
    %c0_58 = arith.constant 0 : index
    %c28 = arith.constant 28 : index
    %39 = vector.load %arg5[%c0_56, %c0_57, %c0_58, %c28] : memref<1x16x16x36xf32, #tpu.memory_space<vmem>>, vector<1x15x16x4xf32>
    %40 = vector.shape_cast %39 : vector<1x15x16x4xf32> to vector<15x16x4xf32>
    %41 = vector.shape_cast %38 : vector<15x16x4xf32> to vector<1x15x16x4xf32>
    tpu.vector_store %arg5[%c0_56, %c0_57, %c0_58, %c28], %41 {strides = array<i32>} : memref<1x16x16x36xf32, #tpu.memory_space<vmem>>, vector<1x15x16x4xf32>,
    %c0_59 = arith.constant 0 : index
    %c1_60 = arith.constant 1 : index
    %c1_61 = arith.constant 1 : index
    %c0_62 = arith.constant 0 : index
    %42 = vector.load %arg1[%c0_59, %c1_60, %c1_61, %c0_62] : memref<1x16x16x4xf32, #tpu.memory_space<vmem>>, vector<1x15x15x4xf32>
    %43 = vector.shape_cast %42 : vector<1x15x15x4xf32> to vector<15x15x4xf32>
    %c0_63 = arith.constant 0 : index
    %c0_64 = arith.constant 0 : index
    %c0_65 = arith.constant 0 : index
    %c32 = arith.constant 32 : index
    %44 = vector.load %arg5[%c0_63, %c0_64, %c0_65, %c32] : memref<1x16x16x36xf32, #tpu.memory_space<vmem>>, vector<1x15x15x4xf32>
    %45 = vector.shape_cast %44 : vector<1x15x15x4xf32> to vector<15x15x4xf32>
    %46 = vector.shape_cast %43 : vector<15x15x4xf32> to vector<1x15x15x4xf32>
    tpu.vector_store %arg5[%c0_63, %c0_64, %c0_65, %c32], %46 {strides = array<i32>} : memref<1x16x16x36xf32, #tpu.memory_space<vmem>>, vector<1x15x15x4xf32>,
    %c0_66 = arith.constant 0 : index
    %c0_67 = arith.constant 0 : index
    %c0_68 = arith.constant 0 : index
    %c0_69 = arith.constant 0 : index
    %47 = vector.load %arg5[%c0_66, %c0_67, %c0_68, %c0_69] : memref<1x16x16x36xf32, #tpu.memory_space<vmem>>, vector<1x16x16x36xf32>
    %48 = vector.shape_cast %47 : vector<1x16x16x36xf32> to vector<16x16x36xf32>
    %49 = vector.shape_cast %48 : vector<16x16x36xf32> to vector<256x36xf32>
    %c0_70 = arith.constant 0 : index
    %c0_71 = arith.constant 0 : index
    %50 = vector.load %arg2[%c0_70, %c0_71] : memref<8x36xf32, #tpu.memory_space<vmem>>, vector<8x36xf32>
    %cst_72 = arith.constant dense<0.000000e+00> : vector<8x256xf32>
    %51 = tpu.matmul %50, %49, %cst_72 {dimension_numbers = #tpu.dot_dimension_numbers<[1], [1], [0], [0], [0, 0, 1, 0], [], []>} : vector<8x36xf32>, vector<256x36xf32>, vector<8x256xf32> -> vector<8x256xf32>
    %c0_73 = arith.constant 0 : index
    %c0_74 = arith.constant 0 : index
    %52 = vector.load %arg3[%c0_73, %c0_74] : memref<8x1xf32, #tpu.memory_space<vmem>>, vector<8x1xf32>
    %53 = vector.broadcast %52 : vector<8x1xf32> to vector<8x256xf32>
    %54 = arith.addf %51, %53 : vector<8x256xf32>
    %c0_75 = arith.constant 0 : index
    %c0_76 = arith.constant 0 : index
    %c0_77 = arith.constant 0 : index
    %55 = vector.load %arg4[%c0_75, %c0_76, %c0_77] : memref<1x8x256xf32, #tpu.memory_space<vmem>>, vector<1x8x256xf32>
    %56 = vector.shape_cast %55 : vector<1x8x256xf32> to vector<8x256xf32>
    %57 = vector.shape_cast %54 : vector<8x256xf32> to vector<1x8x256xf32>
    tpu.vector_store %arg4[%c0_75, %c0_76, %c0_77], %57 {strides = array<i32>} : memref<1x8x256xf32, #tpu.memory_space<vmem>>, vector<1x8x256xf32>,
    return
  }
  func.func @transform_0(%arg0: i32) -> (i32, i32, i32, i32) {
    %c0_i32 = arith.constant 0 : i32
    %c0_i32_0 = arith.constant 0 : i32
    %c0_i32_1 = arith.constant 0 : i32
    %c0_i32_2 = arith.constant 0 : i32
    return %arg0, %c0_i32, %c0_i32_0, %c0_i32_1 : i32, i32, i32, i32
  }
  func.func @transform_1(%arg0: i32) -> (i32, i32) {
    %c0_i32 = arith.constant 0 : i32
    %c0_i32_0 = arith.constant 0 : i32
    %c0_i32_1 = arith.constant 0 : i32
    return %c0_i32, %c0_i32_0 : i32, i32
  }
  func.func @transform_2(%arg0: i32) -> (i32, i32) {
    %c0_i32 = arith.constant 0 : i32
    %c0_i32_0 = arith.constant 0 : i32
    %c0_i32_1 = arith.constant 0 : i32
    return %c0_i32, %c0_i32_0 : i32, i32
  }
  func.func @transform_3(%arg0: i32) -> (i32, i32, i32) {
    %c0_i32 = arith.constant 0 : i32
    %c0_i32_0 = arith.constant 0 : i32
    %c0_i32_1 = arith.constant 0 : i32
    return %arg0, %c0_i32, %c0_i32_0 : i32, i32, i32
  }
}

</mosaic_0001>

<bundles_post_ra>
// kernel: tpu_custom_call.1
= control target key start
LH: loop header
LB: loop body
LE: loop exit
PB: predicated region body
PF: predicated region fallthrough
CT: control target
= control target key end

     0   :  { %8 = vsyncpa [#allocation4], 0  ;;  %s3472_s0 = inlined_call_operand.vmem [shape: f32[2,16,16,4], index: 0, kind: input, shape index: {}]   ;;  %s3473_s1 = inlined_call_operand.vmem [shape: f32[8,36], index: 1, kind: input, shape index: {}]   ;;  %s3474_s2 = inlined_call_operand.vmem [shape: f32[8,1], index: 2, kind: input, shape index: {}]   ;;  %s3475_s3 = inlined_call_operand.hbm [shape: f32[2,8,256], index: 3, kind: output, shape index: {}]  }
   0x1   :  { %10 = vsyncpa [#allocation4 + $0x1], 0  ;;  %s2404_s12 = smov 0   ;;  %s2406_s13 = smov 0  }
   0x2   :  { %s2408_s14 = smov 0   ;;  %s2410_s15 = smov 0  }
   0x3 LB: > { %s2425_s16 = sadd.s32 4294967295, %s2371_s15   ;;  %s2040_s17 = sadd.s32 4294967294, %s2371_s15   ;;  %s2371_s15 = sphi %s2410_s15, %s3483_s15   ;;  %s2367_s14 = sphi %s2408_s14, %s3482_s14   ;;  %s2363_s13 = sphi %s2406_s13, %s3481_s13   ;;  %s2359_s12 = sphi %s2404_s12, %s3480_s12  }
   0x4   : > { %s2429_s18 = sadd.s32 1, %s2371_s15   ;;  %s91_s19 = sadd.s32 1, %s2367_s14 }
   0x5   : > { %s88_s20 = ssub.s32 %s2371_s15, %s2429_s18  ;;  %p101_p0 = scmp.ne.s32.totalorder %s2367_s14, %s2363_s13 }
   0x6   : > { %p89_p1 = scmp.eq.s32.totalorder %s88_s20, 0  ;;  %p102_p2 = scmp.eq.s32.totalorder %s2425_s16, 1 }
   0x7   : > { %p107_p3 = scmp.ne.s32.totalorder %s2363_s13, %s2359_s12  ;;  %p108_p4 = scmp.eq.s32.totalorder %s2040_s17, 1 }
   0x8   : > { %s2440_s21 = scalar_select %p89_p1, %s2367_s14, %s91_s19  }
   0x9   : > { %p2442_p5 = por %p102_p2, %p101_p0  ;;  %p2446_p6 = por %p108_p4, %p107_p3 }
   0xa   : > { %p2043_p7 = scmp.ge.s32.totalorder %s2371_s15, 1  ;;  %p140_p8 = scmp.lt.s32.totalorder %s2371_s15, 3 }
   0xc   : > { %p141_p9 = pnand %p2043_p7, %p140_p8 }
   0xd   : > { %p164_p10 = scmp.lt.s32.totalorder (!%p141_p9), %s2425_s16, 1  ;;  %vm169_vm0 = vcmask (!%p141_p9), 293888   ;;  %v2373_v0 = vmov (!%p141_p9), 0.0   ;;  %vm233_vm1 = vcmask (!%p141_p9), 31744   ;;  %s2374_s29 = smov (!%p141_p9), 4   ;;  %vm235_vm2 = vcmask (!%p141_p9), 30720  }
   0xe   : > { %144 = sbr.rel (%p141_p9) target bundleno = 876 (0x36c), region = 32  ;;  %174 = vst.msk [vmem:[#allocation2 + $0x20] sm:$0xff] (!%p141_p9), %vm169_vm0, %v2373_v0  ;;  %175 = vst.msk [vmem:[#allocation2 + $0x28] sm:$0xff] (!%p141_p9), %vm169_vm0, %v2373_v0  ;;  %s2375_s30 = smov (!%p141_p9), 8   ;;  %vm415_vm3 = vcmask (!%p141_p9), 64544   ;;  %vm598_vm4 = vcmask (!%p141_p9), 96320  }
   0xf   : > { %170 = vst.msk [vmem:[#allocation2] sm:$0xff] (!%p141_p9), %vm169_vm0, %v2373_v0  ;;  %171 = vst.msk [vmem:[#allocation2 + $0x8] sm:$0xff] (!%p141_p9), %vm169_vm0, %v2373_v0  ;;  %s2376_s4 = smov (!%p141_p9), 12   ;;  %s2377_s5 = smov (!%p141_p9), 16   ;;  %vm596_vm5 = vcmask (!%p141_p9), 97344   ;;  %vm790_vm6 = vcmask (!%p141_p9), 129120  }
  0x10   : > { %172 = vst.msk [vmem:[#allocation2 + $0x10] sm:$0xff] (!%p141_p9), %vm169_vm0, %v2373_v0  ;;  %173 = vst.msk [vmem:[#allocation2 + $0x18] sm:$0xff] (!%p141_p9), %vm169_vm0, %v2373_v0  ;;  %s2378_s6 = smov (!%p141_p9), 20   ;;  %s2379_s7 = smov (!%p141_p9), 24   ;;  %vm788_vm7 = vcmask (!%p141_p9), 130144   ;;  %vm982_vm8 = vcmask (!%p141_p9), 162944  }
  0x11   : > { %176 = vst.msk [vmem:[#allocation2 + $0x30] sm:$0xff] (!%p141_p9), %vm169_vm0, %v2373_v0  ;;  %177 = vst.msk [vmem:[#allocation2 + $0x38] sm:$0xff] (!%p141_p9), %vm169_vm0, %v2373_v0  ;;  %s2380_s8 = smov (!%p141_p9), 28   ;;  %s2381_s9 = smov (!%p141_p9), 32   ;;  %vm1177_vm9 = vcmask (!%p141_p9), 194720   ;;  %vm1175_vm10 = vcmask (!%p141_p9), 195744  }
  0x12   : > { %178 = vst.msk [vmem:[#allocation2 + $0x40] sm:$0xff] (!%p141_p9), %vm169_vm0, %v2373_v0  ;;  %179 = vst.msk [vmem:[#allocation2 + $0x48] sm:$0xff] (!%p141_p9), %vm169_vm0, %v2373_v0  ;;  %vm1362_vm11 = vcmask (!%p141_p9), 227520   ;;  %vm1360_vm12 = vcmask (!%p141_p9), 228544   ;;  %vm1542_vm13 = vcmask (!%p141_p9), 261344   ;;  %vm1725_vm14 = vcmask (!%p141_p9), 293120  }
  0x13   : > { %180 = vst.msk [vmem:[#allocation2 + $0x50] sm:$0xff] (!%p141_p9), %vm169_vm0, %v2373_v0  ;;  %181 = vst.msk [vmem:[#allocation2 + $0x58] sm:$0xff] (!%p141_p9), %vm169_vm0, %v2373_v0  ;;  %vm1723_vm15 = vcmask (!%p141_p9), 294144   ;;  %s161_s20 = sand.u32 (!%p141_p9), 1, %s2363_s13  }
  0x14   : > { %182 = vst.msk [vmem:[#allocation2 + $0x60] sm:$0xff] (!%p141_p9), %vm169_vm0, %v2373_v0  ;;  %183 = vst.msk [vmem:[#allocation2 + $0x68] sm:$0xff] (!%p141_p9), %vm169_vm0, %v2373_v0 }
  0x15   : > { %184 = vst.msk [vmem:[#allocation2 + $0x70] sm:$0xff] %vm169_vm0, %v2373_v0  ;;  %185 = vst.msk [vmem:[#allocation2 + $0x78] sm:$0xff] %vm169_vm0, %v2373_v0  ;;  %s165_s24 = scalar_select %p164_p10, %s2425_s16, 1 }
  0x16   : > { %186 = vst.msk [vmem:[#allocation2 + $0x80] sm:$0xff] %vm169_vm0, %v2373_v0  ;;  %187 = vst.msk [vmem:[#allocation2 + $0x88] sm:$0xff] %vm169_vm0, %v2373_v0 }
  0x17   : > { %188 = vst.msk [vmem:[#allocation2 + $0x90] sm:$0xff] %vm169_vm0, %v2373_v0  ;;  %189 = vst.msk [vmem:[#allocation2 + $0x98] sm:$0xff] %vm169_vm0, %v2373_v0  ;;  %s2175_s25 = sshll.u32 %s165_s24, 8  ;;  %s2044_s24 = sshll.u32 %s161_s20, 4 }
  0x18   : > { %190 = vst.msk [vmem:[#allocation2 + $0xa0] sm:$0xff] %vm169_vm0, %v2373_v0  ;;  %191 = vst.msk [vmem:[#allocation2 + $0xa8] sm:$0xff] %vm169_vm0, %v2373_v0  ;;  %s2491_s28 = scalar_lea.vmem %s3472_s0, %s2175_s25  ;;  %s2176_s25 = sshll.u32 %s2425_s16, 8 }
  0x19   : > { %192 = vst.msk [vmem:[#allocation2 + $0xb0] sm:$0xff] %vm169_vm0, %v2373_v0  ;;  %193 = vst.msk [vmem:[#allocation2 + $0xb8] sm:$0xff] %vm169_vm0, %v2373_v0  ;;  %v2494_v1 = vld [vmem:[%s2491_s28 + $0x10] sm:$0xff]  ;;  %v2497_v2 = vld [vmem:[%s2491_s28] sm:$0xff]  ;;  %s163_s26 = scalar_lea.vmem [#allocation3], %s2044_s24 }
  0x1a   : > { %194 = vst.msk [vmem:[#allocation2 + $0xc0] sm:$0xff] %vm169_vm0, %v2373_v0  ;;  %195 = vst.msk [vmem:[#allocation2 + $0xc8] sm:$0xff] %vm169_vm0, %v2373_v0  ;;  %329 = vrot.lane.b32.xlu1 %v2494_v1, %s2374_s29  ;;  %325 = vrot.lane.b32.xlu0 %v2497_v2, %s2374_s29  ;;  %v2504_v3 = vld [vmem:[%s2491_s28 + $0x18] sm:$0xff]  ;;  %v2511_v4 = vld [vmem:[%s2491_s28 + $0x8] sm:$0xff]  ;;  %s1981_s27 = sshll.u32 %s163_s26, 4  ;;  %s3432_s27 = int_to_ptr.vmem [resolvable:$true] %s1981_s27 }
  0x1b   : > { %196 = vst.msk [vmem:[#allocation2 + $0xd0] sm:$0xff] %vm169_vm0, %v2373_v0  ;;  %197 = vst.msk [vmem:[#allocation2 + $0xd8] sm:$0xff] %vm169_vm0, %v2373_v0  ;;  %v2514_v5 = vld [vmem:[%s2491_s28 + $0x20] sm:$0xff]  ;;  %v2517_v6 = vld [vmem:[%s2491_s28 + $0x30] sm:$0xff]  ;;  %s2309_s16 = scalar_lea.vmem %s3432_s27, 256 }
  0x1c   : > { %198 = vst.msk [vmem:[#allocation2 + $0xe0] sm:$0xff] %vm169_vm0, %v2373_v0  ;;  %199 = vst.msk [vmem:[#allocation2 + $0xe8] sm:$0xff] %vm169_vm0, %v2373_v0  ;;  %v2520_v7 = vld [vmem:[%s2491_s28 + $0x40] sm:$0xff]  ;;  %v2527_v8 = vld [vmem:[%s2491_s28 + $0x50] sm:$0xff]  ;;  %p2310_p11 = scmp.ne.s32.totalorder %s3432_s27, %s2309_s16 }
  0x1d   : > { %200 = vst.msk [vmem:[#allocation2 + $0xf0] sm:$0xff] %vm169_vm0, %v2373_v0  ;;  %201 = vst.msk [vmem:[#allocation2 + $0xf8] sm:$0xff] %vm169_vm0, %v2373_v0  ;;  %v277_v9 = vld [vmem:[%s2491_s28 + $0x60] sm:$0xff]  ;;  %v279_v10 = vld [vmem:[%s2491_s28 + $0x70] sm:$0xff] }
  0x1e   : > { %237 = vst.msk [vmem:[#allocation2 + $0x21] sm:$0xff] %vm233_vm1, %v2494_v1  ;;  %234 = vst.msk [vmem:[#allocation2 + $0x11] sm:$0xff] %vm233_vm1, %v2497_v2  ;;  %331 = vrot.lane.b32.xlu1 %v2504_v3, %s2374_s29  ;;  %327 = vrot.lane.b32.xlu0 %v2511_v4, %s2374_s29  ;;  %v2541_v11 = vld [vmem:[%s2491_s28 + $0x28] sm:$0xff]  ;;  %v2544_v12 = vld [vmem:[%s2491_s28 + $0x80] sm:$0xff]  ;;  %p2311_p12 = pnand %p2310_p11, %p2442_p5 }
  0x1f   : > { %239 = vst.msk [vmem:[#allocation2 + $0x31] sm:$0xff] %vm233_vm1, %v2514_v5  ;;  %241 = vst.msk [vmem:[#allocation2 + $0x41] sm:$0xff] %vm233_vm1, %v2517_v6  ;;  %v2548_v13 = vld [vmem:[%s2491_s28 + $0x90] sm:$0xff]  ;;  %v2551_v14 = vld [vmem:[%s2491_s28 + $0xa0] sm:$0xff] }
  0x20   : > { %243 = vst.msk [vmem:[#allocation2 + $0x51] sm:$0xff] %vm233_vm1, %v2520_v7  ;;  %245 = vst.msk [vmem:[#allocation2 + $0x61] sm:$0xff] %vm233_vm1, %v2527_v8  ;;  %v2556_v15 = vld [vmem:[%s2491_s28 + $0xb0] sm:$0xff]  ;;  %v2567_v16 = vld [vmem:[%s2491_s28 + $0xc0] sm:$0xff]  ;;  %p2312_p13 = pneg %p2311_p12 }
  0x21   : > { %247 = vst.msk [vmem:[#allocation2 + $0x71] sm:$0xff] %vm233_vm1, %v277_v9  ;;  %249 = vst.msk [vmem:[#allocation2 + $0x81] sm:$0xff] %vm233_vm1, %v279_v10  ;;  %v272_v17 = vld [vmem:[%s2491_s28 + $0x38] sm:$0xff]  ;;  %v2573_v18 = vld [vmem:[%s2491_s28 + $0xd0] sm:$0xff] }
  0x22   : > { %251 = vst.msk [vmem:[#allocation2 + $0x91] sm:$0xff] %vm233_vm1, %v2544_v12  ;;  %253 = vst.msk [vmem:[#allocation2 + $0xa1] sm:$0xff] %vm233_vm1, %v2548_v13  ;;  %335 = vrot.lane.b32.xlu1 %v2541_v11, %s2374_s29  ;;  %333 = vrot.lane.b32.xlu0 %v2514_v5, %s2374_s29  ;;  %v2576_v19 = vld [vmem:[%s2491_s28 + $0xe0] sm:$0xff]  ;;  %v274_v20 = vld [vmem:[%s2491_s28 + $0x48] sm:$0xff] }
  0x23   : > { %255 = vst.msk [vmem:[#allocation2 + $0xb1] sm:$0xff] %vm233_vm1, %v2551_v14  ;;  %257 = vst.msk [vmem:[#allocation2 + $0xc1] sm:$0xff] %vm233_vm1, %v2556_v15  ;;  %v276_v21 = vld [vmem:[%s2491_s28 + $0x58] sm:$0xff]  ;;  %v278_v22 = vld [vmem:[%s2491_s28 + $0x68] sm:$0xff] }
  0x24   : > { %259 = vst.msk [vmem:[#allocation2 + $0xd1] sm:$0xff] %vm233_vm1, %v2567_v16  ;;  %261 = vst.msk [vmem:[#allocation2 + $0xe1] sm:$0xff] %vm233_vm1, %v2573_v18  ;;  %v205_v23 = vld [vmem:[%s2491_s28 + $0x18] sm:$0x7f]  ;;  %v203_v24 = vld [vmem:[%s2491_s28 + $0x8] sm:$0x7f] }
  0x25   : > { %263 = vst.msk [vmem:[#allocation2 + $0xf1] sm:$0xff] %vm233_vm1, %v2576_v19  ;;  %v207_v25 = vld [vmem:[%s2491_s28 + $0x28] sm:$0x7f]  ;;  %v209_v26 = vld [vmem:[%s2491_s28 + $0x38] sm:$0x7f]  ;;  %vm3040_vm1 = vmpackc.low %vm169_vm0, %vm169_vm0 }
  0x26   : > { %339 = vrot.lane.b32.xlu1 %v272_v17, %s2374_s29  ;;  %337 = vrot.lane.b32.xlu0 %v2517_v6, %s2374_s29  ;;  %238 = vst.msk [vmem:[#allocation2 + $0x29] sm:$0x7f] %vm235_vm2, %v205_v23  ;;  %236 = vst.msk [vmem:[#allocation2 + $0x19] sm:$0x7f] %vm235_vm2, %v203_v24  ;;  %v211_v27 = vld [vmem:[%s2491_s28 + $0x48] sm:$0x7f] }
  0x27   : > { %240 = vst.msk [vmem:[#allocation2 + $0x39] sm:$0x7f] %vm235_vm2, %v207_v25  ;;  %242 = vst.msk [vmem:[#allocation2 + $0x49] sm:$0x7f] %vm235_vm2, %v209_v26  ;;  %v213_v28 = vld [vmem:[%s2491_s28 + $0x58] sm:$0x7f] }
  0x28   : > { %244 = vst.msk [vmem:[#allocation2 + $0x59] sm:$0x7f] %vm235_vm2, %v211_v27  ;;  %v280_v29 = vld [vmem:[%s2491_s28 + $0x78] sm:$0xff]  ;;  %246 = vst.msk [vmem:[#allocation2 + $0x69] sm:$0x7f] %vm235_vm2, %v213_v28  ;;  %v2624_v35 = vld [vmem:[%s2491_s28 + $0x88] sm:$0xff] }
  0x29   : > { %v215_v30 = vld [vmem:[%s2491_s28 + $0x68] sm:$0x7f]  ;;  %v217_v31 = vld [vmem:[%s2491_s28 + $0x78] sm:$0x7f] }
  0x2a   : > { %343 = vrot.lane.b32.xlu1 %v274_v20, %s2374_s29  ;;  %341 = vrot.lane.b32.xlu0 %v2520_v7, %s2374_s29  ;;  %248 = vst.msk [vmem:[#allocation2 + $0x79] sm:$0x7f] %vm235_vm2, %v215_v30  ;;  %250 = vst.msk [vmem:[#allocation2 + $0x89] sm:$0x7f] %vm235_vm2, %v217_v31  ;;  %v219_v32 = vld [vmem:[%s2491_s28 + $0x88] sm:$0x7f] }
  0x2b   : > { %v221_v33 = vld [vmem:[%s2491_s28 + $0x98] sm:$0x7f]  ;;  %252 = vst.msk [vmem:[#allocation2 + $0x99] sm:$0x7f] %vm235_vm2, %v219_v32  ;;  %v223_v34 = vld [vmem:[%s2491_s28 + $0xa8] sm:$0x7f] }
  0x2c   : > { %254 = vst.msk [vmem:[#allocation2 + $0xa9] sm:$0x7f] %vm235_vm2, %v221_v33  ;;  %256 = vst.msk [vmem:[#allocation2 + $0xb9] sm:$0x7f] %vm235_vm2, %v223_v34  ;;  %v225_v36 = vld [vmem:[%s2491_s28 + $0xb8] sm:$0x7f] }
  0x2d   : > { %258 = vst.msk [vmem:[#allocation2 + $0xc9] sm:$0x7f] %vm235_vm2, %v225_v36  ;;  %v2633_v37 = vld [vmem:[%s2491_s28 + $0x98] sm:$0xff]  ;;  %v227_v38 = vld [vmem:[%s2491_s28 + $0xc8] sm:$0x7f] }
  0x2e   : > { %347 = vrot.lane.b32.xlu1 %v276_v21, %s2374_s29  ;;  %345 = vrot.lane.b32.xlu0 %v2527_v8, %s2374_s29  ;;  %260 = vst.msk [vmem:[#allocation2 + $0xd9] sm:$0x7f] %vm235_vm2, %v227_v38  ;;  %v2642_v39 = vld [vmem:[%s2491_s28 + $0xa8] sm:$0xff]  ;;  %v229_v40 = vld [vmem:[%s2491_s28 + $0xd8] sm:$0x7f] }
  0x2f   : > { %262 = vst.msk [vmem:[#allocation2 + $0xe9] sm:$0x7f] %vm235_vm2, %v229_v40  ;;  %v2651_v41 = vld [vmem:[%s2491_s28 + $0xb8] sm:$0xff]  ;;  %v231_v42 = vld [vmem:[%s2491_s28 + $0xe8] sm:$0x7f] }
  0x30   : > { %264 = vst.msk [vmem:[#allocation2 + $0xf9] sm:$0x7f] %vm235_vm2, %v231_v42  ;;  %v290_v43 = vld [vmem:[%s2491_s28 + $0xc8] sm:$0xff]  ;;  %v292_v44 = vld [vmem:[%s2491_s28 + $0xd8] sm:$0xff] }
  0x31   : > { %v294_v45 = vld [vmem:[%s2491_s28 + $0xe8] sm:$0xff]  ;;  %v449_v48 = vld [vmem:[%s2491_s28 + $0x19] sm:$0x7f]  ;;  %v2680_v49 = vld [vmem:[%s2491_s28 + $0x11] sm:$0xff] }
  0x32   : > { %351 = vrot.lane.b32.xlu1 %v278_v22, %s2374_s29  ;;  %349 = vrot.lane.b32.xlu0 %v277_v9, %s2374_s29  ;;  %v447_v46 = vld [vmem:[%s2491_s28 + $0x9] sm:$0x7f]  ;;  %v2673_v47 = vld [vmem:[%s2491_s28 + $0x1] sm:$0xff] }
  0x33   : > { %v451_v50 = vld [vmem:[%s2491_s28 + $0x29] sm:$0x7f]  ;;  %v2687_v51 = vld [vmem:[%s2491_s28 + $0x21] sm:$0xff]  ;;  %v453_v52 = vld [vmem:[%s2491_s28 + $0x39] sm:$0x7f] }
  0x34   : > { %v2694_v53 = vld [vmem:[%s2491_s28 + $0x31] sm:$0xff]  ;;  %v455_v54 = vld [vmem:[%s2491_s28 + $0x49] sm:$0x7f]  ;;  %v454_v55 = vld [vmem:[%s2491_s28 + $0x41] sm:$0xff] }
  0x35   : > { %v457_v56 = vld [vmem:[%s2491_s28 + $0x59] sm:$0x7f]  ;;  %v456_v57 = vld [vmem:[%s2491_s28 + $0x51] sm:$0xff]  ;;  %v459_v58 = vld [vmem:[%s2491_s28 + $0x69] sm:$0x7f] }
  0x36   : > { %355 = vrot.lane.b32.xlu1 %v280_v29, %s2374_s29  ;;  %353 = vrot.lane.b32.xlu0 %v279_v10, %s2374_s29  ;;  %v458_v59 = vld [vmem:[%s2491_s28 + $0x61] sm:$0xff]  ;;  %v461_v60 = vld [vmem:[%s2491_s28 + $0x79] sm:$0x7f] }
  0x37   : > { %v460_v61 = vld [vmem:[%s2491_s28 + $0x71] sm:$0xff]  ;;  %v463_v62 = vld [vmem:[%s2491_s28 + $0x89] sm:$0x7f]  ;;  %v2717_v63 = vld [vmem:[%s2491_s28 + $0x81] sm:$0xff] }
  0x38   : > { %v465_v0 = vld [vmem:[%s2491_s28 + $0x99] sm:$0x7f]  ;;  %v2724_v9 = vld [vmem:[%s2491_s28 + $0x91] sm:$0xff]  ;;  %v467_v10 = vld [vmem:[%s2491_s28 + $0xa9] sm:$0x7f] }
  0x39   : > { %v469_v17 = vld [vmem:[%s2491_s28 + $0xb9] sm:$0x7f]  ;;  %v470_v20 = vld [vmem:[%s2491_s28 + $0xc1] sm:$0xff]  ;;  %v472_v22 = vld [vmem:[%s2491_s28 + $0xd1] sm:$0xff] }
  0x3a   : > { %359 = vrot.lane.b32.xlu1 %v2624_v35, %s2374_s29  ;;  %357 = vrot.lane.b32.xlu0 %v2544_v12, %s2374_s29  ;;  %v473_v21 = vld [vmem:[%s2491_s28 + $0xd9] sm:$0x7f]  ;;  %v475_v23 = vld [vmem:[%s2491_s28 + $0xe9] sm:$0x7f] }
  0x3b   : > { %v474_v24 = vld [vmem:[%s2491_s28 + $0xe1] sm:$0xff]  ;;  %v631_v30 = vld [vmem:[%s2491_s28 + $0x18] sm:$0x7f] }
  0x3c   : > { %v629_v27 = vld [vmem:[%s2491_s28 + $0x8] sm:$0x7f]  ;;  %v635_v38 = vld [vmem:[%s2491_s28 + $0x38] sm:$0x7f] }
  0x3d   : > { %v633_v33 = vld [vmem:[%s2491_s28 + $0x28] sm:$0x7f] }
  0x3e   : > { %363 = vrot.lane.b32.xlu1 %v2633_v37, %s2374_s29  ;;  %361 = vrot.lane.b32.xlu0 %v2548_v13, %s2374_s29 }
  0x42   : > { %367 = vrot.lane.b32.xlu1 %v2642_v39, %s2374_s29  ;;  %365 = vrot.lane.b32.xlu0 %v2551_v14, %s2374_s29 }
  0x46   : > { %371 = vrot.lane.b32.xlu1 %v2651_v41, %s2374_s29  ;;  %369 = vrot.lane.b32.xlu0 %v2556_v15, %s2374_s29 }
  0x4a   : > { %375 = vrot.lane.b32.xlu1 %v290_v43, %s2374_s29  ;;  %373 = vrot.lane.b32.xlu0 %v2567_v16, %s2374_s29  ;;  %v2731_v16 = vld [vmem:[%s2491_s28 + $0xa1] sm:$0xff] }
  0x4b   : > { %v637_v43 = vld [vmem:[%s2491_s28 + $0x48] sm:$0x7f] }
  0x4e   : > { %379 = vrot.lane.b32.xlu1 %v292_v44, %s2374_s29  ;;  %377 = vrot.lane.b32.xlu0 %v2573_v18, %s2374_s29  ;;  %v2738_v18 = vld [vmem:[%s2491_s28 + $0xb1] sm:$0xff] }
  0x52   : > { %383 = vrot.lane.b32.xlu1 %v294_v45, %s2374_s29  ;;  %381 = vrot.lane.b32.xlu0 %v2576_v19, %s2374_s29  ;;  %v471_v19 = vld [vmem:[%s2491_s28 + $0xc9] sm:$0x7f] }
  0x56   : > { %508 = vrot.lane.b32.xlu1 %v447_v46, %s2375_s30  ;;  %506 = vrot.lane.b32.xlu0 %v2673_v47, %s2375_s30  ;;  %v639_v46 = vld [vmem:[%s2491_s28 + $0x58] sm:$0x7f] }
  0x5a   : > { %512 = vrot.lane.b32.xlu1 %v449_v48, %s2375_s30  ;;  %510 = vrot.lane.b32.xlu0 %v2680_v49, %s2375_s30 }
  0x5e   : > { %516 = vrot.lane.b32.xlu1 %v451_v50, %s2375_s30  ;;  %514 = vrot.lane.b32.xlu0 %v2687_v51, %s2375_s30 }
  0x62   : > { %520 = vrot.lane.b32.xlu1 %v453_v52, %s2375_s30  ;;  %518 = vrot.lane.b32.xlu0 %v2694_v53, %s2375_s30  ;;  %v645_v52 = vld [vmem:[%s2491_s28 + $0x88] sm:$0x7f] }
  0x66   : > { %524 = vrot.lane.b32.xlu1 %v455_v54, %s2375_s30  ;;  %522 = vrot.lane.b32.xlu0 %v454_v55, %s2375_s30 }
  0x6a   : > { %528 = vrot.lane.b32.xlu1 %v457_v56, %s2375_s30  ;;  %526 = vrot.lane.b32.xlu0 %v456_v57, %s2375_s30 }
  0x6e   : > { %532 = vrot.lane.b32.xlu1 %v459_v58, %s2375_s30  ;;  %530 = vrot.lane.b32.xlu0 %v458_v59, %s2375_s30  ;;  %v1032_v58 = vld [vmem:[%s2491_s28 + $0x89] sm:$0x7f] }
  0x72   : > { %536 = vrot.lane.b32.xlu1 %v461_v60, %s2375_s30  ;;  %534 = vrot.lane.b32.xlu0 %v460_v61, %s2375_s30 }
  0x76   : > { %540 = vrot.lane.b32.xlu1 %v463_v62, %s2375_s30  ;;  %538 = vrot.lane.b32.xlu0 %v2717_v63, %s2375_s30 }
  0x7a   : > { %544 = vrot.lane.b32.xlu1 %v465_v0, %s2375_s30  ;;  %542 = vrot.lane.b32.xlu0 %v2724_v9, %s2375_s30 }
  0x7e   : > { %548 = vrot.lane.b32.xlu1 %v467_v10, %s2375_s30  ;;  %546 = vrot.lane.b32.xlu0 %v2731_v16, %s2375_s30 }
  0x82   : > { %552 = vrot.lane.b32.xlu1 %v469_v17, %s2375_s30  ;;  %550 = vrot.lane.b32.xlu0 %v2738_v18, %s2375_s30 }
  0x86   : > { %556 = vrot.lane.b32.xlu1 %v471_v19, %s2375_s30  ;;  %554 = vrot.lane.b32.xlu0 %v470_v20, %s2375_s30 }
  0x8a   : > { %560 = vrot.lane.b32.xlu1 %v473_v21, %s2375_s30  ;;  %558 = vrot.lane.b32.xlu0 %v472_v22, %s2375_s30  ;;  %v2124_v21 = vld [vmem:[%s2491_s28 + $0x99] sm:$0x7f] }
  0x8c   : > { %v330_v25 = vpop.permute.xlu1 %329  ;;  %v326_v26 = vpop.permute.xlu0 %325 }
  0x8d   : > { %418 = vst.msk [vmem:[#allocation2 + $0x20] sm:$0xff] %vm415_vm3, %v330_v25  ;;  %416 = vst.msk [vmem:[#allocation2 + $0x10] sm:$0xff] %vm415_vm3, %v326_v26 }
  0x8e   : > { %564 = vrot.lane.b32.xlu1 %v475_v23, %s2375_s30  ;;  %562 = vrot.lane.b32.xlu0 %v474_v24, %s2375_s30  ;;  %v2108_v24 = vld [vmem:[%s2491_s28 + $0x19] sm:$0x7f]  ;;  %s3430_s30 = scalar_lea.hbm %s3475_s3, %s2176_s25 }
  0x90   : > { %v332_v28 = vpop.permute.xlu1 %331  ;;  %v328_v29 = vpop.permute.xlu0 %327 }
  0x91   : > { %419 = vst.msk [vmem:[#allocation2 + $0x28] sm:$0xff] %vm415_vm3, %v332_v28  ;;  %417 = vst.msk [vmem:[#allocation2 + $0x18] sm:$0xff] %vm415_vm3, %v328_v29 }
  0x92   : > { %694 = vrot.lane.b32.xlu1 %v629_v27, %s2376_s4  ;;  %692 = vrot.lane.b32.xlu0 %v2497_v2, %s2376_s4  ;;  %v647_v27 = vld [vmem:[%s2491_s28 + $0x98] sm:$0x7f] }
  0x94   : > { %v336_v31 = vpop.permute.xlu1 %335  ;;  %v334_v32 = vpop.permute.xlu0 %333 }
  0x95   : > { %421 = vst.msk [vmem:[#allocation2 + $0x38] sm:$0xff] %vm415_vm3, %v336_v31  ;;  %420 = vst.msk [vmem:[#allocation2 + $0x30] sm:$0xff] %vm415_vm3, %v334_v32 }
  0x96   : > { %698 = vrot.lane.b32.xlu1 %v631_v30, %s2376_s4  ;;  %696 = vrot.lane.b32.xlu0 %v2494_v1, %s2376_s4 }
  0x98   : > { %v340_v34 = vpop.permute.xlu1 %339  ;;  %v338_v36 = vpop.permute.xlu0 %337 }
  0x99   : > { %423 = vst.msk [vmem:[#allocation2 + $0x48] sm:$0xff] %vm415_vm3, %v340_v34  ;;  %422 = vst.msk [vmem:[#allocation2 + $0x40] sm:$0xff] %vm415_vm3, %v338_v36  ;;  %v1034_v34 = vld [vmem:[%s2491_s28 + $0x99] sm:$0x7f] }
  0x9a   : > { %702 = vrot.lane.b32.xlu1 %v633_v33, %s2376_s4  ;;  %700 = vrot.lane.b32.xlu0 %v2514_v5, %s2376_s4 }
  0x9c   : > { %v344_v40 = vpop.permute.xlu1 %343  ;;  %v342_v42 = vpop.permute.xlu0 %341 }
  0x9d   : > { %425 = vst.msk [vmem:[#allocation2 + $0x58] sm:$0xff] %vm415_vm3, %v344_v40  ;;  %424 = vst.msk [vmem:[#allocation2 + $0x50] sm:$0xff] %vm415_vm3, %v342_v42 }
  0x9e   : > { %706 = vrot.lane.b32.xlu1 %v635_v38, %s2376_s4  ;;  %704 = vrot.lane.b32.xlu0 %v2517_v6, %s2376_s4 }
  0xa0   : > { %v348_v44 = vpop.permute.xlu1 %347  ;;  %v346_v45 = vpop.permute.xlu0 %345 }
  0xa1   : > { %427 = vst.msk [vmem:[#allocation2 + $0x68] sm:$0xff] %vm415_vm3, %v348_v44  ;;  %426 = vst.msk [vmem:[#allocation2 + $0x60] sm:$0xff] %vm415_vm3, %v346_v45 }
  0xa2   : > { %710 = vrot.lane.b32.xlu1 %v637_v43, %s2376_s4  ;;  %708 = vrot.lane.b32.xlu0 %v2520_v7, %s2376_s4 }
  0xa4   : > { %v352_v48 = vpop.permute.xlu1 %351  ;;  %v350_v50 = vpop.permute.xlu0 %349 }
  0xa5   : > { %429 = vst.msk [vmem:[#allocation2 + $0x78] sm:$0xff] %vm415_vm3, %v352_v48  ;;  %428 = vst.msk [vmem:[#allocation2 + $0x70] sm:$0xff] %vm415_vm3, %v350_v50  ;;  %v2126_v50 = vld [vmem:[%s2491_s28 + $0xa9] sm:$0x7f] }
  0xa6   : > { %714 = vrot.lane.b32.xlu1 %v639_v46, %s2376_s4  ;;  %712 = vrot.lane.b32.xlu0 %v2527_v8, %s2376_s4 }
  0xa8   : > { %v356_v54 = vpop.permute.xlu1 %355  ;;  %v354_v55 = vpop.permute.xlu0 %353 }
  0xa9   : > { %431 = vst.msk [vmem:[#allocation2 + $0x88] sm:$0xff] %vm415_vm3, %v356_v54  ;;  %430 = vst.msk [vmem:[#allocation2 + $0x80] sm:$0xff] %vm415_vm3, %v354_v55  ;;  %v2110_v55 = vld [vmem:[%s2491_s28 + $0x29] sm:$0x7f] }
  0xaa   : > { %726 = vrot.lane.b32.xlu1 %v645_v52, %s2376_s4  ;;  %724 = vrot.lane.b32.xlu0 %v2544_v12, %s2376_s4 }
  0xac   : > { %v360_v7 = vpop.permute.xlu1 %359  ;;  %v358_v56 = vpop.permute.xlu0 %357 }
  0xad   : > { %433 = vst.msk [vmem:[#allocation2 + $0x98] sm:$0xff] %vm415_vm3, %v360_v7  ;;  %432 = vst.msk [vmem:[#allocation2 + $0x90] sm:$0xff] %vm415_vm3, %v358_v56 }
  0xae   : > { %920 = vrot.lane.b32.xlu1 %v2624_v35, %s2377_s5  ;;  %918 = vrot.lane.b32.xlu0 %v2544_v12, %s2377_s5  ;;  %v1016_v12 = vld [vmem:[%s2491_s28 + $0x9] sm:$0x7f] }
  0xb0   : > { %v364_v8 = vpop.permute.xlu1 %363  ;;  %v362_v57 = vpop.permute.xlu0 %361 }
  0xb1   : > { %435 = vst.msk [vmem:[#allocation2 + $0xa8] sm:$0xff] %vm415_vm3, %v364_v8  ;;  %434 = vst.msk [vmem:[#allocation2 + $0xa0] sm:$0xff] %vm415_vm3, %v362_v57  ;;  %v649_v8 = vld [vmem:[%s2491_s28 + $0xa8] sm:$0x7f] }
  0xb2   : > { %888 = vrot.lane.b32.xlu1 %v2511_v4, %s2377_s5  ;;  %886 = vrot.lane.b32.xlu0 %v2497_v2, %s2377_s5  ;;  %v2064_v2 = vld [vmem:[%s2491_s28 + $0x98] sm:$0x7f] }
  0xb4   : > { %v368_v59 = vpop.permute.xlu1 %367  ;;  %v366_v35 = vpop.permute.xlu0 %365 }
  0xb5   : > { %437 = vst.msk [vmem:[#allocation2 + $0xb8] sm:$0xff] %vm415_vm3, %v368_v59  ;;  %436 = vst.msk [vmem:[#allocation2 + $0xb0] sm:$0xff] %vm415_vm3, %v366_v35 }
  0xb6   : > { %1113 = vrot.lane.b32.xlu1 %v1032_v58, %s2378_s6  ;;  %1111 = vrot.lane.b32.xlu0 %v2717_v63, %s2378_s6  ;;  %v2048_v63 = vld [vmem:[%s2491_s28 + $0x18] sm:$0x7f] }
  0xb8   : > { %v372_v4 = vpop.permute.xlu1 %371  ;;  %v370_v60 = vpop.permute.xlu0 %369 }
  0xb9   : > { %439 = vst.msk [vmem:[#allocation2 + $0xc8] sm:$0xff] %vm415_vm3, %v372_v4  ;;  %438 = vst.msk [vmem:[#allocation2 + $0xc0] sm:$0xff] %vm415_vm3, %v370_v60  ;;  %v1036_v60 = vld [vmem:[%s2491_s28 + $0xa9] sm:$0x7f] }
  0xba   : > { %1081 = vrot.lane.b32.xlu1 %v1016_v12, %s2378_s6  ;;  %1079 = vrot.lane.b32.xlu0 %v2673_v47, %s2378_s6 }
  0xbc   : > { %v376_v61 = vpop.permute.xlu1 %375  ;;  %v374_v62 = vpop.permute.xlu0 %373 }
  0xbd   : > { %441 = vst.msk [vmem:[#allocation2 + $0xd8] sm:$0xff] %vm415_vm3, %v376_v61  ;;  %440 = vst.msk [vmem:[#allocation2 + $0xd0] sm:$0xff] %vm415_vm3, %v374_v62 }
  0xbe   : > { %1304 = vrot.lane.b32.xlu1 %v2064_v2, %s2379_s7  ;;  %1302 = vrot.lane.b32.xlu0 %v2548_v13, %s2379_s7 }
  0xc0   : > { %v380_v0 = vpop.permute.xlu1 %379  ;;  %v378_v10 = vpop.permute.xlu0 %377 }
  0xc1   : > { %443 = vst.msk [vmem:[#allocation2 + $0xe8] sm:$0xff] %vm415_vm3, %v380_v0  ;;  %442 = vst.msk [vmem:[#allocation2 + $0xe0] sm:$0xff] %vm415_vm3, %v378_v10 }
  0xc2   : > { %1272 = vrot.lane.b32.xlu1 %v2048_v63, %s2379_s7  ;;  %1270 = vrot.lane.b32.xlu0 %v2494_v1, %s2379_s7 }
  0xc4   : > { %v384_v47 = vpop.permute.xlu1 %383  ;;  %v382_v17 = vpop.permute.xlu0 %381 }
  0xc5   : > { %445 = vst.msk [vmem:[#allocation2 + $0xf8] sm:$0xff] %vm415_vm3, %v384_v47  ;;  %444 = vst.msk [vmem:[#allocation2 + $0xf0] sm:$0xff] %vm415_vm3, %v382_v17  ;;  %v2082_v17 = vld [vmem:[%s2491_s28 + $0x38] sm:$0xff] }
  0xc6   : > { %1486 = vrot.lane.b32.xlu1 %v2633_v37, %s2380_s8  ;;  %1484 = vrot.lane.b32.xlu0 %v2548_v13, %s2380_s8 }
  0xc8   : > { %v509_v19 = vpop.permute.xlu1 %508  ;;  %v507_v20 = vpop.permute.xlu0 %506 }
  0xc9   : > { %599 = vst.msk [vmem:[#allocation2 + $0x18] sm:$0x7f] %vm598_vm4, %v509_v19  ;;  %v2081_v19 = vld [vmem:[%s2491_s28 + $0x30] sm:$0xff] }
  0xca   : > { %597 = vst.msk [vmem:[#allocation2 + $0x10] sm:$0xff] %vm596_vm5, %v507_v20  ;;  %1454 = vrot.lane.b32.xlu1 %v2504_v3, %s2380_s8  ;;  %1452 = vrot.lane.b32.xlu0 %v2494_v1, %s2380_s8 }
  0xcc   : > { %v513_v22 = vpop.permute.xlu1 %512  ;;  %v511_v23 = vpop.permute.xlu0 %510 }
  0xcd   : > { %601 = vst.msk [vmem:[#allocation2 + $0x28] sm:$0x7f] %vm598_vm4, %v513_v22 }
  0xce   : > { %600 = vst.msk [vmem:[#allocation2 + $0x20] sm:$0xff] %vm596_vm5, %v511_v23  ;;  %1667 = vrot.lane.b32.xlu1 %v2124_v21, %s2381_s9  ;;  %1665 = vrot.lane.b32.xlu0 %v2724_v9, %s2381_s9  ;;  %v2112_v23 = vld [vmem:[%s2491_s28 + $0x39] sm:$0x7f] }
  0xd0   : > { %v517_v25 = vpop.permute.xlu1 %516  ;;  %v515_v26 = vpop.permute.xlu0 %514 }
  0xd1   : > { %603 = vst.msk [vmem:[#allocation2 + $0x38] sm:$0x7f] %vm598_vm4, %v517_v25 }
  0xd2   : > { %602 = vst.msk [vmem:[#allocation2 + $0x30] sm:$0xff] %vm596_vm5, %v515_v26  ;;  %1635 = vrot.lane.b32.xlu1 %v2108_v24, %s2381_s9  ;;  %1633 = vrot.lane.b32.xlu0 %v2680_v49, %s2381_s9  ;;  %v651_v26 = vld [vmem:[%s2491_s28 + $0xb8] sm:$0x7f] }
  0xd4   : > { %v521_v28 = vpop.permute.xlu1 %520  ;;  %v519_v29 = vpop.permute.xlu0 %518 }
  0xd5   : > { %605 = vst.msk [vmem:[#allocation2 + $0x48] sm:$0x7f] %vm598_vm4, %v521_v28 }
  0xd6   : > { %604 = vst.msk [vmem:[#allocation2 + $0x40] sm:$0xff] %vm596_vm5, %v519_v29  ;;  %730 = vrot.lane.b32.xlu1 %v647_v27, %s2376_s4  ;;  %728 = vrot.lane.b32.xlu0 %v2548_v13, %s2376_s4  ;;  %v845_v29 = vld [vmem:[%s2491_s28 + $0xb8] sm:$0xff] }
  0xd8   : > { %v525_v30 = vpop.permute.xlu1 %524  ;;  %v523_v31 = vpop.permute.xlu0 %522 }
  0xd9   : > { %607 = vst.msk [vmem:[#allocation2 + $0x58] sm:$0x7f] %vm598_vm4, %v525_v30  ;;  %v844_v30 = vld [vmem:[%s2491_s28 + $0xb0] sm:$0xff] }
  0xda   : > { %606 = vst.msk [vmem:[#allocation2 + $0x50] sm:$0xff] %vm596_vm5, %v523_v31  ;;  %924 = vrot.lane.b32.xlu1 %v2633_v37, %s2377_s5  ;;  %922 = vrot.lane.b32.xlu0 %v2548_v13, %s2377_s5  ;;  %v1018_v13 = vld [vmem:[%s2491_s28 + $0x19] sm:$0x7f] }
  0xdc   : > { %v529_v32 = vpop.permute.xlu1 %528  ;;  %v527_v33 = vpop.permute.xlu0 %526 }
  0xdd   : > { %609 = vst.msk [vmem:[#allocation2 + $0x68] sm:$0x7f] %vm598_vm4, %v529_v32 }
  0xde   : > { %608 = vst.msk [vmem:[#allocation2 + $0x60] sm:$0xff] %vm596_vm5, %v527_v33  ;;  %892 = vrot.lane.b32.xlu1 %v2504_v3, %s2377_s5  ;;  %890 = vrot.lane.b32.xlu0 %v2494_v1, %s2377_s5  ;;  %v2066_v1 = vld [vmem:[%s2491_s28 + $0xa8] sm:$0x7f] }
  0xe0   : > { %v533_v36 = vpop.permute.xlu1 %532  ;;  %v531_v38 = vpop.permute.xlu0 %530 }
  0xe1   : > { %611 = vst.msk [vmem:[#allocation2 + $0x78] sm:$0x7f] %vm598_vm4, %v533_v36 }
  0xe2   : > { %610 = vst.msk [vmem:[#allocation2 + $0x70] sm:$0xff] %vm596_vm5, %v531_v38  ;;  %1117 = vrot.lane.b32.xlu1 %v1034_v34, %s2378_s6  ;;  %1115 = vrot.lane.b32.xlu0 %v2724_v9, %s2378_s6  ;;  %v2050_v9 = vld [vmem:[%s2491_s28 + $0x28] sm:$0x7f]  ;;  %v1022_v38 = vld [vmem:[%s2491_s28 + $0x39] sm:$0x7f] }
  0xe4   : > { %v537_v37 = vpop.permute.xlu1 %536  ;;  %v535_v3 = vpop.permute.xlu0 %534 }
  0xe5   : > { %613 = vst.msk [vmem:[#allocation2 + $0x88] sm:$0x7f] %vm598_vm4, %v537_v37 }
  0xe6   : > { %612 = vst.msk [vmem:[#allocation2 + $0x80] sm:$0xff] %vm596_vm5, %v535_v3  ;;  %1085 = vrot.lane.b32.xlu1 %v1018_v13, %s2378_s6  ;;  %1083 = vrot.lane.b32.xlu0 %v2680_v49, %s2378_s6  ;;  %v1021_v13 = vld [vmem:[%s2491_s28 + $0x31] sm:$0xff] }
  0xe8   : > { %v541_v40 = vpop.permute.xlu1 %540  ;;  %v539_v42 = vpop.permute.xlu0 %538 }
  0xe9   : > { %615 = vst.msk [vmem:[#allocation2 + $0x98] sm:$0x7f] %vm598_vm4, %v541_v40  ;;  %v3021_v40 = vld [vmem:[%s2491_s28 + $0xc0] sm:$0xff] }
  0xea   : > { %614 = vst.msk [vmem:[#allocation2 + $0x90] sm:$0xff] %vm596_vm5, %v539_v42  ;;  %1308 = vrot.lane.b32.xlu1 %v2066_v1, %s2379_s7  ;;  %1306 = vrot.lane.b32.xlu0 %v2551_v14, %s2379_s7  ;;  %v2070_v1 = vld [vmem:[%s2491_s28 + $0xc8] sm:$0x7f] }
  0xec   : > { %v545_v43 = vpop.permute.xlu1 %544  ;;  %v543_v44 = vpop.permute.xlu0 %542 }
  0xed   : > { %617 = vst.msk [vmem:[#allocation2 + $0xa8] sm:$0x7f] %vm598_vm4, %v545_v43  ;;  %v3030_v43 = vld [vmem:[%s2491_s28 + $0x40] sm:$0xff] }
  0xee   : > { %616 = vst.msk [vmem:[#allocation2 + $0xa0] sm:$0xff] %vm596_vm5, %v543_v44  ;;  %1276 = vrot.lane.b32.xlu1 %v2050_v9, %s2379_s7  ;;  %1274 = vrot.lane.b32.xlu0 %v2514_v5, %s2379_s7  ;;  %v2054_v9 = vld [vmem:[%s2491_s28 + $0x48] sm:$0x7f] }
  0xf0   : > { %v549_v49 = vpop.permute.xlu1 %548  ;;  %v547_v45 = vpop.permute.xlu0 %546 }
  0xf1   : > { %619 = vst.msk [vmem:[#allocation2 + $0xb8] sm:$0x7f] %vm598_vm4, %v549_v49 }
  0xf2   : > { %618 = vst.msk [vmem:[#allocation2 + $0xb0] sm:$0xff] %vm596_vm5, %v547_v45  ;;  %1490 = vrot.lane.b32.xlu1 %v2642_v39, %s2380_s8  ;;  %1488 = vrot.lane.b32.xlu0 %v2551_v14, %s2380_s8  ;;  %v2100_v45 = vld [vmem:[%s2491_s28 + $0xc8] sm:$0xff] }
  0xf4   : > { %v553_v46 = vpop.permute.xlu1 %552  ;;  %v551_v48 = vpop.permute.xlu0 %550 }
  0xf5   : > { %621 = vst.msk [vmem:[#allocation2 + $0xc8] sm:$0x7f] %vm598_vm4, %v553_v46 }
  0xf6   : > { %620 = vst.msk [vmem:[#allocation2 + $0xc0] sm:$0xff] %vm596_vm5, %v551_v48  ;;  %1458 = vrot.lane.b32.xlu1 %v2541_v11, %s2380_s8  ;;  %1456 = vrot.lane.b32.xlu0 %v2514_v5, %s2380_s8 }
  0xf8   : > { %v557_v52 = vpop.permute.xlu1 %556  ;;  %v555_v54 = vpop.permute.xlu0 %554 }
  0xf9   : > { %623 = vst.msk [vmem:[#allocation2 + $0xd8] sm:$0x7f] %vm598_vm4, %v557_v52 }
  0xfa   : > { %622 = vst.msk [vmem:[#allocation2 + $0xd0] sm:$0xff] %vm596_vm5, %v555_v54  ;;  %1671 = vrot.lane.b32.xlu1 %v2126_v50, %s2381_s9  ;;  %1669 = vrot.lane.b32.xlu0 %v2731_v16, %s2381_s9 }
  0xfc   : > { %v561_v7 = vpop.permute.xlu1 %560  ;;  %v559_v56 = vpop.permute.xlu0 %558 }
  0xfd   : > { %625 = vst.msk [vmem:[#allocation2 + $0xe8] sm:$0x7f] %vm598_vm4, %v561_v7  ;;  %v2084_v7 = vld [vmem:[%s2491_s28 + $0x48] sm:$0xff] }
  0xfe   : > { %624 = vst.msk [vmem:[#allocation2 + $0xe0] sm:$0xff] %vm596_vm5, %v559_v56  ;;  %1639 = vrot.lane.b32.xlu1 %v2110_v55, %s2381_s9  ;;  %1637 = vrot.lane.b32.xlu0 %v2687_v51, %s2381_s9 }
 0x100   : > { %v565_v57 = vpop.permute.xlu1 %564  ;;  %v563_v58 = vpop.permute.xlu0 %562 }
 0x101   : > { %627 = vst.msk [vmem:[#allocation2 + $0xf8] sm:$0x7f] %vm598_vm4, %v565_v57 }
 0x102   : > { %626 = vst.msk [vmem:[#allocation2 + $0xf0] sm:$0xff] %vm596_vm5, %v563_v58  ;;  %734 = vrot.lane.b32.xlu1 %v649_v8, %s2376_s4  ;;  %732 = vrot.lane.b32.xlu0 %v2551_v14, %s2376_s4 }
 0x104   : > { %v695_v59 = vpop.permute.xlu1 %694  ;;  %v693_v35 = vpop.permute.xlu0 %692 }
 0x105   : > { %791 = vst.msk [vmem:[#allocation2 + $0x9] sm:$0x7f] %vm790_vm6, %v695_v59 }
 0x106   : > { %789 = vst.msk [vmem:[#allocation2 + $0x1] sm:$0xff] %vm788_vm7, %v693_v35  ;;  %928 = vrot.lane.b32.xlu1 %v2642_v39, %s2377_s5  ;;  %926 = vrot.lane.b32.xlu0 %v2551_v14, %s2377_s5  ;;  %v1020_v14 = vld [vmem:[%s2491_s28 + $0x29] sm:$0x7f] }
 0x107   : > { %v2130_v35 = vld [vmem:[%s2491_s28 + $0xc9] sm:$0x7f] }
 0x108   : > { %v699_v12 = vpop.permute.xlu1 %698  ;;  %v697_v4 = vpop.permute.xlu0 %696 }
 0x109   : > { %793 = vst.msk [vmem:[#allocation2 + $0x19] sm:$0x7f] %vm790_vm6, %v699_v12  ;;  %v2129_v12 = vld [vmem:[%s2491_s28 + $0xc1] sm:$0xff] }
 0x10a   : > { %792 = vst.msk [vmem:[#allocation2 + $0x11] sm:$0xff] %vm788_vm7, %v697_v4  ;;  %896 = vrot.lane.b32.xlu1 %v2541_v11, %s2377_s5  ;;  %894 = vrot.lane.b32.xlu0 %v2514_v5, %s2377_s5  ;;  %v2068_v5 = vld [vmem:[%s2491_s28 + $0xb8] sm:$0x7f] }
 0x10c   : > { %v703_v2 = vpop.permute.xlu1 %702  ;;  %v701_v61 = vpop.permute.xlu0 %700 }
 0x10d   : > { %795 = vst.msk [vmem:[#allocation2 + $0x29] sm:$0x7f] %vm790_vm6, %v703_v2  ;;  %v2114_v2 = vld [vmem:[%s2491_s28 + $0x49] sm:$0x7f] }
 0x10e   : > { %794 = vst.msk [vmem:[#allocation2 + $0x21] sm:$0xff] %vm788_vm7, %v701_v61  ;;  %1121 = vrot.lane.b32.xlu1 %v1036_v60, %s2378_s6  ;;  %1119 = vrot.lane.b32.xlu0 %v2731_v16, %s2378_s6  ;;  %v2052_v16 = vld [vmem:[%s2491_s28 + $0x38] sm:$0x7f]  ;;  %v2113_v61 = vld [vmem:[%s2491_s28 + $0x41] sm:$0xff] }
 0x110   : > { %v707_v39 = vpop.permute.xlu1 %706  ;;  %v705_v11 = vpop.permute.xlu0 %704 }
 0x111   : > { %797 = vst.msk [vmem:[#allocation2 + $0x39] sm:$0x7f] %vm790_vm6, %v707_v39 }
 0x112   : > { %796 = vst.msk [vmem:[#allocation2 + $0x31] sm:$0xff] %vm788_vm7, %v705_v11  ;;  %1089 = vrot.lane.b32.xlu1 %v1020_v14, %s2378_s6  ;;  %1087 = vrot.lane.b32.xlu0 %v2687_v51, %s2378_s6  ;;  %v653_v11 = vld [vmem:[%s2491_s28 + $0xc8] sm:$0x7f] }
 0x114   : > { %v711_v62 = vpop.permute.xlu1 %710  ;;  %v709_v63 = vpop.permute.xlu0 %708 }
 0x115   : > { %799 = vst.msk [vmem:[#allocation2 + $0x49] sm:$0x7f] %vm790_vm6, %v711_v62 }
 0x116   : > { %798 = vst.msk [vmem:[#allocation2 + $0x41] sm:$0xff] %vm788_vm7, %v709_v63  ;;  %1312 = vrot.lane.b32.xlu1 %v2068_v5, %s2379_s7  ;;  %1310 = vrot.lane.b32.xlu0 %v2556_v15, %s2379_s7 }
 0x118   : > { %v715_v0 = vpop.permute.xlu1 %714  ;;  %v713_v10 = vpop.permute.xlu0 %712 }
 0x119   : > { %801 = vst.msk [vmem:[#allocation2 + $0x59] sm:$0x7f] %vm790_vm6, %v715_v0 }
 0x11a   : > { %800 = vst.msk [vmem:[#allocation2 + $0x51] sm:$0xff] %vm788_vm7, %v713_v10  ;;  %1280 = vrot.lane.b32.xlu1 %v2052_v16, %s2379_s7  ;;  %1278 = vrot.lane.b32.xlu0 %v2517_v6, %s2379_s7  ;;  %v2128_v6 = vld [vmem:[%s2491_s28 + $0xb9] sm:$0x7f] }
 0x11c   : > { %v727_v51 = vpop.permute.xlu1 %726  ;;  %v725_v47 = vpop.permute.xlu0 %724 }
 0x11d   : > { %807 = vst.msk [vmem:[#allocation2 + $0x89] sm:$0x7f] %vm790_vm6, %v727_v51  ;;  %v1040_v51 = vld [vmem:[%s2491_s28 + $0xc9] sm:$0x7f] }
 0x11e   : > { %806 = vst.msk [vmem:[#allocation2 + $0x81] sm:$0xff] %vm788_vm7, %v725_v47  ;;  %1494 = vrot.lane.b32.xlu1 %v2651_v41, %s2380_s8  ;;  %1492 = vrot.lane.b32.xlu0 %v2556_v15, %s2380_s8 }
 0x120   : > { %v921_v20 = vpop.permute.xlu1 %920  ;;  %v919_v21 = vpop.permute.xlu0 %918 }
 0x121   : > { %1000 = vst.msk [vmem:[#allocation2 + $0x88] sm:$0xff] %vm982_vm8, %v921_v20  ;;  %999 = vst.msk [vmem:[#allocation2 + $0x80] sm:$0xff] %vm982_vm8, %v919_v21 }
 0x122   : > { %1462 = vrot.lane.b32.xlu1 %v2082_v17, %s2380_s8  ;;  %1460 = vrot.lane.b32.xlu0 %v2081_v19, %s2380_s8 }
 0x124   : > { %v889_v41 = vpop.permute.xlu1 %888  ;;  %v887_v22 = vpop.permute.xlu0 %886 }
 0x125   : > { %984 = vst.msk [vmem:[#allocation2 + $0x8] sm:$0xff] %vm982_vm8, %v889_v41  ;;  %983 = vst.msk [vmem:[#allocation2] sm:$0xff] %vm982_vm8, %v887_v22  ;;  %v3099_v41 = vld [vmem:[%s2491_s28 + $0xd0] sm:$0xff] }
 0x126   : > { %1675 = vrot.lane.b32.xlu1 %v2128_v6, %s2381_s9  ;;  %1673 = vrot.lane.b32.xlu0 %v2738_v18, %s2381_s9  ;;  %v2072_v6 = vld [vmem:[%s2491_s28 + $0xd8] sm:$0x7f] }
 0x128   : > { %v1114_v24 = vpop.permute.xlu1 %1113  ;;  %v1112_v25 = vpop.permute.xlu0 %1111 }
 0x129   : > { %1194 = vst.msk [vmem:[#allocation2 + $0x88] sm:$0x7f] %vm1177_vm9, %v1114_v24  ;;  %v2056_v24 = vld [vmem:[%s2491_s28 + $0x58] sm:$0x7f] }
 0x12a   : > { %1193 = vst.msk [vmem:[#allocation2 + $0x80] sm:$0xff] %vm1175_vm10, %v1112_v25  ;;  %1643 = vrot.lane.b32.xlu1 %v2112_v23, %s2381_s9  ;;  %1641 = vrot.lane.b32.xlu0 %v2694_v53, %s2381_s9  ;;  %v2055_v25 = vld [vmem:[%s2491_s28 + $0x50] sm:$0xff] }
 0x12c   : > { %v1082_v27 = vpop.permute.xlu1 %1081  ;;  %v1080_v28 = vpop.permute.xlu0 %1079 }
 0x12d   : > { %1178 = vst.msk [vmem:[#allocation2 + $0x8] sm:$0x7f] %vm1177_vm9, %v1082_v27 }
 0x12e   : > { %1176 = vst.msk [vmem:[#allocation2] sm:$0xff] %vm1175_vm10, %v1080_v28  ;;  %738 = vrot.lane.b32.xlu1 %v651_v26, %s2376_s4  ;;  %736 = vrot.lane.b32.xlu0 %v2556_v15, %s2376_s4  ;;  %v1038_v15 = vld [vmem:[%s2491_s28 + $0xb9] sm:$0x7f] }
 0x12f   : > { %v2102_v28 = vld [vmem:[%s2491_s28 + $0xd8] sm:$0xff] }
 0x130   : > { %v1305_v31 = vpop.permute.xlu1 %1304  ;;  %v1303_v32 = vpop.permute.xlu0 %1302 }
 0x131   : > { %1379 = vst.msk [vmem:[#allocation2 + $0x89] sm:$0x7f] %vm1362_vm11, %v1305_v31 }
 0x132   : > { %1378 = vst.msk [vmem:[#allocation2 + $0x81] sm:$0xff] %vm1360_vm12, %v1303_v32  ;;  %932 = vrot.lane.b32.xlu1 %v845_v29, %s2377_s5  ;;  %930 = vrot.lane.b32.xlu0 %v844_v30, %s2377_s5 }
 0x134   : > { %v1273_v53 = vpop.permute.xlu1 %1272  ;;  %v1271_v33 = vpop.permute.xlu0 %1270 }
 0x135   : > { %1363 = vst.msk [vmem:[#allocation2 + $0x9] sm:$0x7f] %vm1362_vm11, %v1273_v53 }
 0x136   : > { %1361 = vst.msk [vmem:[#allocation2 + $0x1] sm:$0xff] %vm1360_vm12, %v1271_v33  ;;  %900 = vrot.lane.b32.xlu1 %v2082_v17, %s2377_s5  ;;  %898 = vrot.lane.b32.xlu0 %v2081_v19, %s2377_s5  ;;  %v1024_v19 = vld [vmem:[%s2491_s28 + $0x49] sm:$0x7f]  ;;  %v2086_v33 = vld [vmem:[%s2491_s28 + $0x58] sm:$0xff] }
 0x138   : > { %v1487_v34 = vpop.permute.xlu1 %1486  ;;  %v1485_v36 = vpop.permute.xlu0 %1484 }
 0x139   : > { %1560 = vst.msk [vmem:[#allocation2 + $0x88] sm:$0xff] %vm1542_vm13, %v1487_v34  ;;  %1559 = vst.msk [vmem:[#allocation2 + $0x80] sm:$0xff] %vm1542_vm13, %v1485_v36 }
 0x13a   : > { %1125 = vrot.lane.b32.xlu1 %v1038_v15, %s2378_s6  ;;  %1123 = vrot.lane.b32.xlu0 %v2738_v18, %s2378_s6 }
 0x13c   : > { %v1455_v37 = vpop.permute.xlu1 %1454  ;;  %v1453_v3 = vpop.permute.xlu0 %1452 }
 0x13d   : > { %1544 = vst.msk [vmem:[#allocation2 + $0x8] sm:$0xff] %vm1542_vm13, %v1455_v37  ;;  %1543 = vst.msk [vmem:[#allocation2] sm:$0xff] %vm1542_vm13, %v1453_v3  ;;  %v2132_v37 = vld [vmem:[%s2491_s28 + $0xd9] sm:$0x7f]  ;;  %v2131_v3 = vld [vmem:[%s2491_s28 + $0xd1] sm:$0xff] }
 0x13e   : > { %1093 = vrot.lane.b32.xlu1 %v1022_v38, %s2378_s6  ;;  %1091 = vrot.lane.b32.xlu0 %v1021_v13, %s2378_s6 }
 0x140   : > { %v1668_v18 = vpop.permute.xlu1 %1667  ;;  %v1666_v42 = vpop.permute.xlu0 %1665 }
 0x141   : > { %1742 = vst.msk [vmem:[#allocation2 + $0x88] sm:$0x7f] %vm1725_vm14, %v1668_v18  ;;  %v2116_v18 = vld [vmem:[%s2491_s28 + $0x59] sm:$0x7f] }
 0x142   : > { %1741 = vst.msk [vmem:[#allocation2 + $0x80] sm:$0xff] %vm1723_vm15, %v1666_v42  ;;  %1316 = vrot.lane.b32.xlu1 %v2070_v1, %s2379_s7  ;;  %1314 = vrot.lane.b32.xlu0 %v3021_v40, %s2379_s7  ;;  %v2115_v42 = vld [vmem:[%s2491_s28 + $0x51] sm:$0xff] }
 0x144   : > { %v1636_v44 = vpop.permute.xlu1 %1635  ;;  %v1634_v49 = vpop.permute.xlu0 %1633 }
 0x145   : > { %1726 = vst.msk [vmem:[#allocation2 + $0x8] sm:$0x7f] %vm1725_vm14, %v1636_v44  ;;  %v655_v44 = vld [vmem:[%s2491_s28 + $0xd8] sm:$0x7f] }
 0x146   : > { %1724 = vst.msk [vmem:[#allocation2] sm:$0xff] %vm1723_vm15, %v1634_v49  ;;  %1284 = vrot.lane.b32.xlu1 %v2054_v9, %s2379_s7  ;;  %1282 = vrot.lane.b32.xlu0 %v3030_v43, %s2379_s7 }
 0x148   : > { %v731_v46 = vpop.permute.xlu1 %730  ;;  %v729_v48 = vpop.permute.xlu0 %728  ;;  %v1772_v52 = vld [vmem:[#allocation2 + $0x88] sm:$0xff] }
 0x149   : > { %v1771_v50 = vld [vmem:[#allocation2 + $0x80] sm:$0xff]  ;;  %809 = vst.msk [vmem:[#allocation2 + $0x99] sm:$0x7f] %vm790_vm6, %v731_v46 }
 0x14a   : > { %808 = vst.msk [vmem:[#allocation2 + $0x91] sm:$0xff] %vm788_vm7, %v729_v48  ;;  %v2211_v55 = vpack.c.bf16 %v1772_v52, %v1771_v50  ;;  %1498 = vrot.lane.b32.xlu1 %v2100_v45, %s2380_s8  ;;  %1496 = vrot.lane.b32.xlu0 %v3021_v40, %s2380_s8 }
 0x14c   : > { %2213 = vmatprep.subr.msk.bf16.mxu0 %vm3040_vm1, %v2211_v55  ;;  %v925_v56 = vpop.permute.xlu1 %924  ;;  %v923_v8 = vpop.permute.xlu0 %922  ;;  %v1756_v58 = vld [vmem:[#allocation2 + $0x8] sm:$0xff]  ;;  %v1042_v55 = vld [vmem:[%s2491_s28 + $0xd9] sm:$0x7f] }
 0x14d   : > { %v1755_v57 = vld [vmem:[#allocation2] sm:$0xff]  ;;  %1002 = vst.msk [vmem:[#allocation2 + $0x98] sm:$0xff] %vm982_vm8, %v925_v56  ;;  %1001 = vst.msk [vmem:[#allocation2 + $0x90] sm:$0xff] %vm982_vm8, %v923_v8  ;;  %v1026_v8 = vld [vmem:[%s2491_s28 + $0x59] sm:$0x7f] }
 0x14e   : > { %v2214_v59 = vpack.c.bf16 %v1756_v58, %v1755_v57  ;;  %1466 = vrot.lane.b32.xlu1 %v2084_v7, %s2380_s8  ;;  %1464 = vrot.lane.b32.xlu0 %v3030_v43, %s2380_s8 }
 0x150   : > { %2216 = vmatpush3.bf16.xpose.msk.msra.mxu0 %vm3040_vm1, %v2214_v59  ;;  %v893_v4 = vpop.permute.xlu1 %892  ;;  %v891_v60 = vpop.permute.xlu0 %890  ;;  %v2074_v59 = vld [vmem:[%s2491_s28 + $0xe8] sm:$0x7f] }
 0x151   : > { %986 = vst.msk [vmem:[#allocation2 + $0x18] sm:$0xff] %vm982_vm8, %v893_v4  ;;  %985 = vst.msk [vmem:[#allocation2 + $0x10] sm:$0xff] %vm982_vm8, %v891_v60  ;;  %v2058_v60 = vld [vmem:[%s2491_s28 + $0x68] sm:$0x7f] }
 0x152   : > { %1679 = vrot.lane.b32.xlu1 %v2130_v35, %s2381_s9  ;;  %1677 = vrot.lane.b32.xlu0 %v2129_v12, %s2381_s9  ;;  %v3166_v35 = vld [vmem:[%s2491_s28 + $0xe0] sm:$0xff] }
 0x154   : > { %v1118_v14 = vpop.permute.xlu1 %1117  ;;  %v1116_v39 = vpop.permute.xlu0 %1115 }
 0x155   : > { %1196 = vst.msk [vmem:[#allocation2 + $0x98] sm:$0x7f] %vm1177_vm9, %v1118_v14 }
 0x156   : > { %1195 = vst.msk [vmem:[#allocation2 + $0x90] sm:$0xff] %vm1175_vm10, %v1116_v39  ;;  %1647 = vrot.lane.b32.xlu1 %v2114_v2, %s2381_s9  ;;  %1645 = vrot.lane.b32.xlu0 %v2113_v61, %s2381_s9  ;;  %v3175_v2 = vld [vmem:[%s2491_s28 + $0x60] sm:$0xff]  ;;  %v2104_v39 = vld [vmem:[%s2491_s28 + $0xe8] sm:$0xff] }
 0x158   : > { %v1086_v5 = vpop.permute.xlu1 %1085  ;;  %v1084_v62 = vpop.permute.xlu0 %1083 }
 0x159   : > { %1180 = vst.msk [vmem:[#allocation2 + $0x18] sm:$0x7f] %vm1177_vm9, %v1086_v5 }
 0x15a   : > { %1179 = vst.msk [vmem:[#allocation2 + $0x10] sm:$0xff] %vm1175_vm10, %v1084_v62  ;;  %742 = vrot.lane.b32.xlu1 %v653_v11, %s2376_s4  ;;  %740 = vrot.lane.b32.xlu0 %v3021_v40, %s2376_s4 }
 0x15c   : > { %v1309_v63 = vpop.permute.xlu1 %1308  ;;  %v1307_v16 = vpop.permute.xlu0 %1306 }
 0x15d   : > { %1381 = vst.msk [vmem:[#allocation2 + $0x99] sm:$0x7f] %vm1362_vm11, %v1309_v63 }
 0x15e   : > { %1380 = vst.msk [vmem:[#allocation2 + $0x91] sm:$0xff] %vm1360_vm12, %v1307_v16  ;;  %936 = vrot.lane.b32.xlu1 %v2100_v45, %s2377_s5  ;;  %934 = vrot.lane.b32.xlu0 %v3021_v40, %s2377_s5 }
 0x160   : > { %v1277_v0 = vpop.permute.xlu1 %1276  ;;  %v1275_v10 = vpop.permute.xlu0 %1274 }
 0x161   : > { %1365 = vst.msk [vmem:[#allocation2 + $0x19] sm:$0x7f] %vm1362_vm11, %v1277_v0  ;;  %v2088_v0 = vld [vmem:[%s2491_s28 + $0x68] sm:$0xff] }
 0x162   : > { %1364 = vst.msk [vmem:[#allocation2 + $0x11] sm:$0xff] %vm1360_vm12, %v1275_v10  ;;  %904 = vrot.lane.b32.xlu1 %v2084_v7, %s2377_s5  ;;  %902 = vrot.lane.b32.xlu0 %v3030_v43, %s2377_s5 }
 0x164   : > { %v1491_v47 = vpop.permute.xlu1 %1490  ;;  %v1489_v17 = vpop.permute.xlu0 %1488 }
 0x165   : > { %1562 = vst.msk [vmem:[#allocation2 + $0x98] sm:$0xff] %vm1542_vm13, %v1491_v47  ;;  %1561 = vst.msk [vmem:[#allocation2 + $0x90] sm:$0xff] %vm1542_vm13, %v1489_v17 }
 0x166   : > { %1129 = vrot.lane.b32.xlu1 %v1040_v51, %s2378_s6  ;;  %1127 = vrot.lane.b32.xlu0 %v2129_v12, %s2378_s6 }
 0x168   : > { %v1459_v20 = vpop.permute.xlu1 %1458  ;;  %v1457_v21 = vpop.permute.xlu0 %1456 }
 0x169   : > { %1546 = vst.msk [vmem:[#allocation2 + $0x18] sm:$0xff] %vm1542_vm13, %v1459_v20  ;;  %1545 = vst.msk [vmem:[#allocation2 + $0x10] sm:$0xff] %vm1542_vm13, %v1457_v21  ;;  %v2134_v20 = vld [vmem:[%s2491_s28 + $0xe9] sm:$0x7f]  ;;  %v2133_v21 = vld [vmem:[%s2491_s28 + $0xe1] sm:$0xff] }
 0x16a   : > { %1097 = vrot.lane.b32.xlu1 %v1024_v19, %s2378_s6  ;;  %1095 = vrot.lane.b32.xlu0 %v2113_v61, %s2378_s6 }
 0x16c   : > { %v1672_v22 = vpop.permute.xlu1 %1671  ;;  %v1670_v23 = vpop.permute.xlu0 %1669 }
 0x16d   : > { %1744 = vst.msk [vmem:[#allocation2 + $0x98] sm:$0x7f] %vm1725_vm14, %v1672_v22  ;;  %v2118_v22 = vld [vmem:[%s2491_s28 + $0x69] sm:$0x7f] }
 0x16e   : > { %1743 = vst.msk [vmem:[#allocation2 + $0x90] sm:$0xff] %vm1723_vm15, %v1670_v23  ;;  %1320 = vrot.lane.b32.xlu1 %v2072_v6, %s2379_s7  ;;  %1318 = vrot.lane.b32.xlu0 %v3099_v41, %s2379_s7  ;;  %v2117_v23 = vld [vmem:[%s2491_s28 + $0x61] sm:$0xff] }
 0x170   : > { %v1640_v26 = vpop.permute.xlu1 %1639  ;;  %v1638_v27 = vpop.permute.xlu0 %1637 }
 0x171   : > { %1728 = vst.msk [vmem:[#allocation2 + $0x18] sm:$0x7f] %vm1725_vm14, %v1640_v26  ;;  %v657_v26 = vld [vmem:[%s2491_s28 + $0xe8] sm:$0x7f] }
 0x172   : > { %1727 = vst.msk [vmem:[#allocation2 + $0x10] sm:$0xff] %vm1723_vm15, %v1638_v27  ;;  %1288 = vrot.lane.b32.xlu1 %v2056_v24, %s2379_s7  ;;  %1286 = vrot.lane.b32.xlu0 %v2055_v25, %s2379_s7 }
 0x174   : > { %v735_v29 = vpop.permute.xlu1 %734  ;;  %v733_v30 = vpop.permute.xlu0 %732  ;;  %v1774_v32 = vld [vmem:[#allocation2 + $0x98] sm:$0xff] }
 0x175   : > { %v1773_v31 = vld [vmem:[#allocation2 + $0x90] sm:$0xff]  ;;  %811 = vst.msk [vmem:[#allocation2 + $0xa9] sm:$0x7f] %vm790_vm6, %v735_v29  ;;  %v641_v29 = vld [vmem:[%s2491_s28 + $0x68] sm:$0x7f] }
 0x176   : > { %810 = vst.msk [vmem:[#allocation2 + $0xa1] sm:$0xff] %vm788_vm7, %v733_v30  ;;  %v2217_v53 = vpack.c.bf16 %v1774_v32, %v1773_v31  ;;  %1502 = vrot.lane.b32.xlu1 %v2102_v28, %s2380_s8  ;;  %1500 = vrot.lane.b32.xlu0 %v3099_v41, %s2380_s8 }
 0x178   : > { %2219 = vmatprep.subr.msk.bf16.mxu0 %vm3040_vm1, %v2217_v53  ;;  %v929_v15 = vpop.permute.xlu1 %928  ;;  %v927_v34 = vpop.permute.xlu0 %926  ;;  %v1758_v38 = vld [vmem:[#allocation2 + $0x18] sm:$0xff] }
 0x179   : > { %v1757_v36 = vld [vmem:[#allocation2 + $0x10] sm:$0xff]  ;;  %1004 = vst.msk [vmem:[#allocation2 + $0xa8] sm:$0xff] %vm982_vm8, %v929_v15  ;;  %1003 = vst.msk [vmem:[#allocation2 + $0xa0] sm:$0xff] %vm982_vm8, %v927_v34  ;;  %v1044_v34 = vld [vmem:[%s2491_s28 + $0xe9] sm:$0x7f] }
 0x17a   : > { %v2220_v13 = vpack.c.bf16 %v1758_v38, %v1757_v36  ;;  %1470 = vrot.lane.b32.xlu1 %v2086_v33, %s2380_s8  ;;  %1468 = vrot.lane.b32.xlu0 %v2055_v25, %s2380_s8 }
 0x17c   : > { %2222 = vmatpush3.bf16.xpose.msk.msra.mxu0 %vm3040_vm1, %v2220_v13  ;;  %v897_v1 = vpop.permute.xlu1 %896  ;;  %v895_v40 = vpop.permute.xlu0 %894  ;;  %v1028_v13 = vld [vmem:[%s2491_s28 + $0x69] sm:$0x7f] }
 0x17d   : > { %988 = vst.msk [vmem:[#allocation2 + $0x28] sm:$0xff] %vm982_vm8, %v897_v1  ;;  %987 = vst.msk [vmem:[#allocation2 + $0x20] sm:$0xff] %vm982_vm8, %v895_v40  ;;  %v2076_v1 = vld [vmem:[%s2491_s28 + $0xf8] sm:$0x7f]  ;;  %v3244_v40 = vld [vmem:[%s2491_s28 + $0xf0] sm:$0xff] }
 0x17e   : > { %1683 = vrot.lane.b32.xlu1 %v2132_v37, %s2381_s9  ;;  %1681 = vrot.lane.b32.xlu0 %v2131_v3, %s2381_s9 }
 0x180   : > { %v1122_v9 = vpop.permute.xlu1 %1121  ;;  %v1120_v43 = vpop.permute.xlu0 %1119 }
 0x181   : > { %1198 = vst.msk [vmem:[#allocation2 + $0xa8] sm:$0x7f] %vm1177_vm9, %v1122_v9  ;;  %v2060_v9 = vld [vmem:[%s2491_s28 + $0x78] sm:$0x7f] }
 0x182   : > { %1197 = vst.msk [vmem:[#allocation2 + $0xa0] sm:$0xff] %vm1175_vm10, %v1120_v43  ;;  %1651 = vrot.lane.b32.xlu1 %v2116_v18, %s2381_s9  ;;  %1649 = vrot.lane.b32.xlu0 %v2115_v42, %s2381_s9  ;;  %v2059_v43 = vld [vmem:[%s2491_s28 + $0x70] sm:$0xff] }
 0x184   : > { %v1090_v49 = vpop.permute.xlu1 %1089  ;;  %v1088_v45 = vpop.permute.xlu0 %1087 }
 0x185   : > { %1182 = vst.msk [vmem:[#allocation2 + $0x28] sm:$0x7f] %vm1177_vm9, %v1090_v49 }
 0x186   : > { %1181 = vst.msk [vmem:[#allocation2 + $0x20] sm:$0xff] %vm1175_vm10, %v1088_v45  ;;  %746 = vrot.lane.b32.xlu1 %v655_v44, %s2376_s4  ;;  %744 = vrot.lane.b32.xlu0 %v3099_v41, %s2376_s4 }
 0x188   : > { %v1313_v46 = vpop.permute.xlu1 %1312  ;;  %v1311_v48 = vpop.permute.xlu0 %1310 }
 0x189   : > { %1383 = vst.msk [vmem:[#allocation2 + $0xa9] sm:$0x7f] %vm1362_vm11, %v1313_v46 }
 0x18a   : > { %1382 = vst.msk [vmem:[#allocation2 + $0xa1] sm:$0xff] %vm1360_vm12, %v1311_v48  ;;  %940 = vrot.lane.b32.xlu1 %v2102_v28, %s2377_s5  ;;  %938 = vrot.lane.b32.xlu0 %v3099_v41, %s2377_s5 }
 0x18c   : > { %v1281_v50 = vpop.permute.xlu1 %1280  ;;  %v1279_v52 = vpop.permute.xlu0 %1278 }
 0x18d   : > { %1367 = vst.msk [vmem:[#allocation2 + $0x29] sm:$0x7f] %vm1362_vm11, %v1281_v50  ;;  %v3260_v50 = vld [vmem:[%s2491_s28 + $0xf8] sm:$0xff] }
 0x18e   : > { %1366 = vst.msk [vmem:[#allocation2 + $0x21] sm:$0xff] %vm1360_vm12, %v1279_v52  ;;  %908 = vrot.lane.b32.xlu1 %v2086_v33, %s2377_s5  ;;  %906 = vrot.lane.b32.xlu0 %v2055_v25, %s2377_s5 }
 0x190   : > { %v1495_v7 = vpop.permute.xlu1 %1494  ;;  %v1493_v56 = vpop.permute.xlu0 %1492 }
 0x191   : > { %1564 = vst.msk [vmem:[#allocation2 + $0xa8] sm:$0xff] %vm1542_vm13, %v1495_v7  ;;  %1563 = vst.msk [vmem:[#allocation2 + $0xa0] sm:$0xff] %vm1542_vm13, %v1493_v56 }
 0x192   : > { %1133 = vrot.lane.b32.xlu1 %v1042_v55, %s2378_s6  ;;  %1131 = vrot.lane.b32.xlu0 %v2131_v3, %s2378_s6 }
 0x194   : > { %v1463_v57 = vpop.permute.xlu1 %1462  ;;  %v1461_v58 = vpop.permute.xlu0 %1460 }
 0x195   : > { %1548 = vst.msk [vmem:[#allocation2 + $0x28] sm:$0xff] %vm1542_vm13, %v1463_v57  ;;  %1547 = vst.msk [vmem:[#allocation2 + $0x20] sm:$0xff] %vm1542_vm13, %v1461_v58  ;;  %v2090_v57 = vld [vmem:[%s2491_s28 + $0x78] sm:$0xff] }
 0x196   : > { %1101 = vrot.lane.b32.xlu1 %v1026_v8, %s2378_s6  ;;  %1099 = vrot.lane.b32.xlu0 %v2115_v42, %s2378_s6 }
 0x198   : > { %v1676_v12 = vpop.permute.xlu1 %1675  ;;  %v1674_v4 = vpop.permute.xlu0 %1673 }
 0x199   : > { %1746 = vst.msk [vmem:[#allocation2 + $0xa8] sm:$0x7f] %vm1725_vm14, %v1676_v12  ;;  %v3277_v12 = vld [vmem:[%s2491_s28 + $0xf1] sm:$0xff] }
 0x19a   : > { %1745 = vst.msk [vmem:[#allocation2 + $0xa0] sm:$0xff] %vm1723_vm15, %v1674_v4  ;;  %1324 = vrot.lane.b32.xlu1 %v2074_v59, %s2379_s7  ;;  %1322 = vrot.lane.b32.xlu0 %v3166_v35, %s2379_s7 }
 0x19c   : > { %v1644_v61 = vpop.permute.xlu1 %1643  ;;  %v1642_v14 = vpop.permute.xlu0 %1641 }
 0x19d   : > { %1730 = vst.msk [vmem:[#allocation2 + $0x28] sm:$0x7f] %vm1725_vm14, %v1644_v61  ;;  %v2119_v61 = vld [vmem:[%s2491_s28 + $0x71] sm:$0xff] }
 0x19e   : > { %1729 = vst.msk [vmem:[#allocation2 + $0x20] sm:$0xff] %vm1723_vm15, %v1642_v14  ;;  %1292 = vrot.lane.b32.xlu1 %v2058_v60, %s2379_s7  ;;  %1290 = vrot.lane.b32.xlu0 %v3175_v2, %s2379_s7 }
 0x1a0   : > { %v739_v11 = vpop.permute.xlu1 %738  ;;  %v737_v5 = vpop.permute.xlu0 %736  ;;  %v1776_v63 = vld [vmem:[#allocation2 + $0xa8] sm:$0xff] }
 0x1a1   : > { %v1775_v62 = vld [vmem:[#allocation2 + $0xa0] sm:$0xff]  ;;  %813 = vst.msk [vmem:[#allocation2 + $0xb9] sm:$0x7f] %vm790_vm6, %v739_v11  ;;  %v643_v11 = vld [vmem:[%s2491_s28 + $0x78] sm:$0x7f] }
 0x1a2   : > { %812 = vst.msk [vmem:[#allocation2 + $0xb1] sm:$0xff] %vm788_vm7, %v737_v5  ;;  %v2223_v16 = vpack.c.bf16 %v1776_v63, %v1775_v62  ;;  %1506 = vrot.lane.b32.xlu1 %v2104_v39, %s2380_s8  ;;  %1504 = vrot.lane.b32.xlu0 %v3166_v35, %s2380_s8 }
 0x1a4   : > { %2225 = vmatprep.subr.msk.bf16.mxu0 %vm3040_vm1, %v2223_v16  ;;  %v933_v10 = vpop.permute.xlu1 %932  ;;  %v931_v51 = vpop.permute.xlu0 %930  ;;  %v1760_v17 = vld [vmem:[#allocation2 + $0x28] sm:$0xff] }
 0x1a5   : > { %v1759_v47 = vld [vmem:[#allocation2 + $0x20] sm:$0xff]  ;;  %1006 = vst.msk [vmem:[#allocation2 + $0xb8] sm:$0xff] %vm982_vm8, %v933_v10  ;;  %1005 = vst.msk [vmem:[#allocation2 + $0xb0] sm:$0xff] %vm982_vm8, %v931_v51 }
 0x1a6   : > { %v2226_v19 = vpack.c.bf16 %v1760_v17, %v1759_v47  ;;  %1474 = vrot.lane.b32.xlu1 %v2088_v0, %s2380_s8  ;;  %1472 = vrot.lane.b32.xlu0 %v3175_v2, %s2380_s8  ;;  %v1030_v47 = vld [vmem:[%s2491_s28 + $0x79] sm:$0x7f] }
 0x1a8   : > { %2228 = vmatpush3.bf16.xpose.msk.msra.mxu0 %vm3040_vm1, %v2226_v19  ;;  %v901_v6 = vpop.permute.xlu1 %900  ;;  %v899_v41 = vpop.permute.xlu0 %898 }
 0x1a9   : > { %990 = vst.msk [vmem:[#allocation2 + $0x38] sm:$0xff] %vm982_vm8, %v901_v6  ;;  %989 = vst.msk [vmem:[#allocation2 + $0x30] sm:$0xff] %vm982_vm8, %v899_v41  ;;  %v2062_v6 = vld [vmem:[%s2491_s28 + $0x88] sm:$0x7f]  ;;  %v2061_v41 = vld [vmem:[%s2491_s28 + $0x80] sm:$0xff] }
 0x1aa   : > { %1687 = vrot.lane.b32.xlu1 %v2134_v20, %s2381_s9  ;;  %1685 = vrot.lane.b32.xlu0 %v2133_v21, %s2381_s9 }
 0x1ac   : > { %v1126_v24 = vpop.permute.xlu1 %1125  ;;  %v1124_v25 = vpop.permute.xlu0 %1123 }
 0x1ad   : > { %1200 = vst.msk [vmem:[#allocation2 + $0xb8] sm:$0x7f] %vm1177_vm9, %v1126_v24  ;;  %v1046_v24 = vld [vmem:[%s2491_s28 + $0xf9] sm:$0x7f] }
 0x1ae   : > { %1199 = vst.msk [vmem:[#allocation2 + $0xb0] sm:$0xff] %vm1175_vm10, %v1124_v25  ;;  %1655 = vrot.lane.b32.xlu1 %v2118_v22, %s2381_s9  ;;  %1653 = vrot.lane.b32.xlu0 %v2117_v23, %s2381_s9 }
 0x1b0   : > { %v1094_v27 = vpop.permute.xlu1 %1093  ;;  %v1092_v28 = vpop.permute.xlu0 %1091 }
 0x1b1   : > { %1184 = vst.msk [vmem:[#allocation2 + $0x38] sm:$0x7f] %vm1177_vm9, %v1094_v27 }
 0x1b2   : > { %1183 = vst.msk [vmem:[#allocation2 + $0x30] sm:$0xff] %vm1175_vm10, %v1092_v28  ;;  %750 = vrot.lane.b32.xlu1 %v657_v26, %s2376_s4  ;;  %748 = vrot.lane.b32.xlu0 %v3166_v35, %s2376_s4 }
 0x1b4   : > { %v1317_v30 = vpop.permute.xlu1 %1316  ;;  %v1315_v31 = vpop.permute.xlu0 %1314 }
 0x1b5   : > { %1385 = vst.msk [vmem:[#allocation2 + $0xb9] sm:$0x7f] %vm1362_vm11, %v1317_v30  ;;  %v2092_v30 = vld [vmem:[%s2491_s28 + $0x88] sm:$0xff] }
 0x1b6   : > { %1384 = vst.msk [vmem:[#allocation2 + $0xb1] sm:$0xff] %vm1360_vm12, %v1315_v31  ;;  %718 = vrot.lane.b32.xlu1 %v641_v29, %s2376_s4  ;;  %716 = vrot.lane.b32.xlu0 %v3175_v2, %s2376_s4 }
 0x1b8   : > { %v1285_v32 = vpop.permute.xlu1 %1284  ;;  %v1283_v53 = vpop.permute.xlu0 %1282 }
 0x1b9   : > { %1369 = vst.msk [vmem:[#allocation2 + $0x39] sm:$0x7f] %vm1362_vm11, %v1285_v32 }
 0x1ba   : > { %1368 = vst.msk [vmem:[#allocation2 + $0x31] sm:$0xff] %vm1360_vm12, %v1283_v53  ;;  %944 = vrot.lane.b32.xlu1 %v2104_v39, %s2377_s5  ;;  %942 = vrot.lane.b32.xlu0 %v3166_v35, %s2377_s5  ;;  %v2136_v35 = vld [vmem:[%s2491_s28 + $0xf9] sm:$0x7f] }
 0x1bc   : > { %v1499_v33 = vpop.permute.xlu1 %1498  ;;  %v1497_v15 = vpop.permute.xlu0 %1496 }
 0x1bd   : > { %1566 = vst.msk [vmem:[#allocation2 + $0xb8] sm:$0xff] %vm1542_vm13, %v1499_v33  ;;  %1565 = vst.msk [vmem:[#allocation2 + $0xb0] sm:$0xff] %vm1542_vm13, %v1497_v15 }
 0x1be   : > { %912 = vrot.lane.b32.xlu1 %v2088_v0, %s2377_s5  ;;  %910 = vrot.lane.b32.xlu0 %v3175_v2, %s2377_s5  ;;  %v2120_v2 = vld [vmem:[%s2491_s28 + $0x79] sm:$0x7f] }
 0x1bf   : > { %v659_v0 = vld [vmem:[%s2491_s28 + $0xf8] sm:$0x7f] }
 0x1c0   : > { %v1467_v36 = vpop.permute.xlu1 %1466  ;;  %v1465_v38 = vpop.permute.xlu0 %1464 }
 0x1c1   : > { %1550 = vst.msk [vmem:[#allocation2 + $0x38] sm:$0xff] %vm1542_vm13, %v1467_v36  ;;  %1549 = vst.msk [vmem:[#allocation2 + $0x30] sm:$0xff] %vm1542_vm13, %v1465_v38  ;;  %v2121_v36 = vld [vmem:[%s2491_s28 + $0x81] sm:$0xff] }
 0x1c2   : > { %1137 = vrot.lane.b32.xlu1 %v1044_v34, %s2378_s6  ;;  %1135 = vrot.lane.b32.xlu0 %v2133_v21, %s2378_s6  ;;  %v2122_v34 = vld [vmem:[%s2491_s28 + $0x89] sm:$0x7f]  ;;  %v3342_v38 = vld [vmem:[%s3473_s1] sm:$0xff] }
 0x1c3   : > { %2209 = vmatprep.mubr.msk.f32.mxu0 %vm169_vm0, %v3342_v38 }
 0x1c4   : > { %v1680_v37 = vpop.permute.xlu1 %1679  ;;  %v1678_v3 = vpop.permute.xlu0 %1677 }
 0x1c5   : > { %1748 = vst.msk [vmem:[#allocation2 + $0xb8] sm:$0x7f] %vm1725_vm14, %v1680_v37 }
 0x1c6   : > { %1747 = vst.msk [vmem:[#allocation2 + $0xb0] sm:$0xff] %vm1723_vm15, %v1678_v3  ;;  %1105 = vrot.lane.b32.xlu1 %v1028_v13, %s2378_s6  ;;  %1103 = vrot.lane.b32.xlu0 %v2117_v23, %s2378_s6 }
 0x1c8   : > { %v1648_v18 = vpop.permute.xlu1 %1647  ;;  %v1646_v42 = vpop.permute.xlu0 %1645 }
 0x1c9   : > { %1732 = vst.msk [vmem:[#allocation2 + $0x38] sm:$0x7f] %vm1725_vm14, %v1648_v18  ;;  %v2382_v18 = vmov 0  }
 0x1ca   : > { %1731 = vst.msk [vmem:[#allocation2 + $0x30] sm:$0xff] %vm1723_vm15, %v1646_v42  ;;  %1328 = vrot.lane.b32.xlu1 %v2076_v1, %s2379_s7  ;;  %1326 = vrot.lane.b32.xlu0 %v3244_v40, %s2379_s7 }
 0x1cb   : > { %2308 = vset.pattern.permute.xlu0 %v2382_v18 }
 0x1cc   : > { %v743_v44 = vpop.permute.xlu1 %742  ;;  %v741_v49 = vpop.permute.xlu0 %740  ;;  %v1778_v46 = vld [vmem:[#allocation2 + $0xb8] sm:$0xff] }
 0x1cd   : > { %v1777_v45 = vld [vmem:[#allocation2 + $0xb0] sm:$0xff]  ;;  %815 = vst.msk [vmem:[#allocation2 + $0xc9] sm:$0x7f] %vm790_vm6, %v743_v44 }
 0x1ce   : > { %814 = vst.msk [vmem:[#allocation2 + $0xc1] sm:$0xff] %vm788_vm7, %v741_v49  ;;  %v2229_v48 = vpack.c.bf16 %v1778_v46, %v1777_v45  ;;  %1296 = vrot.lane.b32.xlu1 %v2060_v9, %s2379_s7  ;;  %1294 = vrot.lane.b32.xlu0 %v2059_v43, %s2379_s7 }
 0x1d0   : > { %2231 = vmatprep.subr.msk.bf16.mxu0 %vm3040_vm1, %v2229_v48  ;;  %v937_v52 = vpop.permute.xlu1 %936  ;;  %v935_v55 = vpop.permute.xlu0 %934  ;;  %v1762_v56 = vld [vmem:[#allocation2 + $0x38] sm:$0xff] }
 0x1d1   : > { %v1761_v7 = vld [vmem:[#allocation2 + $0x30] sm:$0xff]  ;;  %1008 = vst.msk [vmem:[#allocation2 + $0xc8] sm:$0xff] %vm982_vm8, %v937_v52  ;;  %1007 = vst.msk [vmem:[#allocation2 + $0xc0] sm:$0xff] %vm982_vm8, %v935_v55 }
 0x1d2   : > { %v2232_v8 = vpack.c.bf16 %v1762_v56, %v1761_v7  ;;  %1510 = vrot.lane.b32.xlu1 %v3260_v50, %s2380_s8  ;;  %1508 = vrot.lane.b32.xlu0 %v3244_v40, %s2380_s8 }
 0x1d4   : > { %2234 = vmatpush3.bf16.xpose.msk.msra.mxu0 %vm3040_vm1, %v2232_v8  ;;  %v905_v58 = vpop.permute.xlu1 %904  ;;  %v903_v59 = vpop.permute.xlu0 %902 }
 0x1d5   : > { %992 = vst.msk [vmem:[#allocation2 + $0x48] sm:$0xff] %vm982_vm8, %v905_v58  ;;  %991 = vst.msk [vmem:[#allocation2 + $0x40] sm:$0xff] %vm982_vm8, %v903_v59 }
 0x1d6   : > { %1478 = vrot.lane.b32.xlu1 %v2090_v57, %s2380_s8  ;;  %1476 = vrot.lane.b32.xlu0 %v2059_v43, %s2380_s8 }
 0x1d8   : > { %v1130_v4 = vpop.permute.xlu1 %1129  ;;  %v1128_v60 = vpop.permute.xlu0 %1127 }
 0x1d9   : > { %1202 = vst.msk [vmem:[#allocation2 + $0xc8] sm:$0x7f] %vm1177_vm9, %v1130_v4 }
 0x1da   : > { %1201 = vst.msk [vmem:[#allocation2 + $0xc0] sm:$0xff] %vm1175_vm10, %v1128_v60  ;;  %1691 = vrot.lane.b32.xlu1 %v2136_v35, %s2381_s9  ;;  %1689 = vrot.lane.b32.xlu0 %v3277_v12, %s2381_s9 }
 0x1dc   : > { %v1098_v14 = vpop.permute.xlu1 %1097  ;;  %v1096_v39 = vpop.permute.xlu0 %1095 }
 0x1dd   : > { %1186 = vst.msk [vmem:[#allocation2 + $0x48] sm:$0x7f] %vm1177_vm9, %v1098_v14 }
 0x1de   : > { %1185 = vst.msk [vmem:[#allocation2 + $0x40] sm:$0xff] %vm1175_vm10, %v1096_v39  ;;  %1659 = vrot.lane.b32.xlu1 %v2120_v2, %s2381_s9  ;;  %1657 = vrot.lane.b32.xlu0 %v2119_v61, %s2381_s9 }
 0x1e0   : > { %v1321_v5 = vpop.permute.xlu1 %1320  ;;  %v1319_v62 = vpop.permute.xlu0 %1318 }
 0x1e1   : > { %1387 = vst.msk [vmem:[#allocation2 + $0xc9] sm:$0x7f] %vm1362_vm11, %v1321_v5 }
 0x1e2   : > { %1386 = vst.msk [vmem:[#allocation2 + $0xc1] sm:$0xff] %vm1360_vm12, %v1319_v62  ;;  %722 = vrot.lane.b32.xlu1 %v643_v11, %s2376_s4  ;;  %720 = vrot.lane.b32.xlu0 %v2059_v43, %s2376_s4 }
 0x1e4   : > { %v1289_v63 = vpop.permute.xlu1 %1288  ;;  %v1287_v16 = vpop.permute.xlu0 %1286 }
 0x1e5   : > { %1371 = vst.msk [vmem:[#allocation2 + $0x49] sm:$0x7f] %vm1362_vm11, %v1289_v63 }
 0x1e6   : > { %1370 = vst.msk [vmem:[#allocation2 + $0x41] sm:$0xff] %vm1360_vm12, %v1287_v16  ;;  %916 = vrot.lane.b32.xlu1 %v2090_v57, %s2377_s5  ;;  %914 = vrot.lane.b32.xlu0 %v2059_v43, %s2377_s5 }
 0x1e8   : > { %v1503_v10 = vpop.permute.xlu1 %1502  ;;  %v1501_v51 = vpop.permute.xlu0 %1500 }
 0x1e9   : > { %1568 = vst.msk [vmem:[#allocation2 + $0xc8] sm:$0xff] %vm1542_vm13, %v1503_v10  ;;  %1567 = vst.msk [vmem:[#allocation2 + $0xc0] sm:$0xff] %vm1542_vm13, %v1501_v51 }
 0x1ea   : > { %754 = vrot.lane.b32.xlu1 %v659_v0, %s2376_s4  ;;  %752 = vrot.lane.b32.xlu0 %v3244_v40, %s2376_s4  ;;  %s1967_s4 = scalar_lea.sflag [#allocation4], %s161_s20 }
 0x1ec   : > { %v1471_v17 = vpop.permute.xlu1 %1470  ;;  %v1469_v19 = vpop.permute.xlu0 %1468 }
 0x1ed   : > { %1552 = vst.msk [vmem:[#allocation2 + $0x48] sm:$0xff] %vm1542_vm13, %v1471_v17  ;;  %1551 = vst.msk [vmem:[#allocation2 + $0x40] sm:$0xff] %vm1542_vm13, %v1469_v19 }
 0x1ee   : > { %1109 = vrot.lane.b32.xlu1 %v1030_v47, %s2378_s6  ;;  %1107 = vrot.lane.b32.xlu0 %v2119_v61, %s2378_s6 }
 0x1f0   : > { %v1684_v20 = vpop.permute.xlu1 %1683  ;;  %v1682_v21 = vpop.permute.xlu0 %1681 }
 0x1f1   : > { %1750 = vst.msk [vmem:[#allocation2 + $0xc8] sm:$0x7f] %vm1725_vm14, %v1684_v20 }
 0x1f2   : > { %1749 = vst.msk [vmem:[#allocation2 + $0xc0] sm:$0xff] %vm1723_vm15, %v1682_v21  ;;  %948 = vrot.lane.b32.xlu1 %v3260_v50, %s2377_s5  ;;  %946 = vrot.lane.b32.xlu0 %v3244_v40, %s2377_s5  ;;  %v1788_v40 = vld [vmem:[%s3474_s2] sm:$0xff]  ;;  %s2383_s5 = smov [#allocation3]  }
 0x1f4   : > { %v1652_v22 = vpop.permute.xlu1 %1651  ;;  %v1650_v23 = vpop.permute.xlu0 %1649 }
 0x1f5   : > { %1734 = vst.msk [vmem:[#allocation2 + $0x48] sm:$0x7f] %vm1725_vm14, %v1652_v22 }
 0x1f6   : > { %1733 = vst.msk [vmem:[#allocation2 + $0x40] sm:$0xff] %vm1723_vm15, %v1650_v23  ;;  %1300 = vrot.lane.b32.xlu1 %v2062_v6, %s2379_s7  ;;  %1298 = vrot.lane.b32.xlu0 %v2061_v41, %s2379_s7 }
 0x1f8   : > { %v747_v25 = vpop.permute.xlu1 %746  ;;  %v745_v26 = vpop.permute.xlu0 %744  ;;  %v1780_v28 = vld [vmem:[#allocation2 + $0xc8] sm:$0xff] }
 0x1f9   : > { %v1779_v27 = vld [vmem:[#allocation2 + $0xc0] sm:$0xff]  ;;  %817 = vst.msk [vmem:[#allocation2 + $0xd9] sm:$0x7f] %vm790_vm6, %v747_v25 }
 0x1fa   : > { %816 = vst.msk [vmem:[#allocation2 + $0xd1] sm:$0xff] %vm788_vm7, %v745_v26  ;;  %v2235_v29 = vpack.c.bf16 %v1780_v28, %v1779_v27  ;;  %1141 = vrot.lane.b32.xlu1 %v1046_v24, %s2378_s6  ;;  %1139 = vrot.lane.b32.xlu0 %v3277_v12, %s2378_s6  ;;  %s2313_s6 = sshll.u32 %s2383_s5, 4  ;;  %s2314_s6 = int_to_ptr.vmem [resolvable:$false] %s2313_s6 }
 0x1fb   : > { %s2315_s7 = scalar_lea.vmem %s2314_s6, 512  ;;  %p2316_p0 = scmp.lt.s32.totalorder %s3432_s27, %s2314_s6 }
 0x1fc   : > { %2237 = vmatprep.subr.msk.bf16.mxu0 %vm3040_vm1, %v2235_v29  ;;  %v941_v31 = vpop.permute.xlu1 %940  ;;  %v939_v32 = vpop.permute.xlu0 %938  ;;  %v1764_v33 = vld [vmem:[#allocation2 + $0x48] sm:$0xff]  ;;  %p2317_p1 = scmp.lt.s32.totalorder %s2315_s7, %s2309_s16 }
 0x1fd   : > { %v1763_v53 = vld [vmem:[#allocation2 + $0x40] sm:$0xff]  ;;  %1010 = vst.msk [vmem:[#allocation2 + $0xd8] sm:$0xff] %vm982_vm8, %v941_v31  ;;  %1009 = vst.msk [vmem:[#allocation2 + $0xd0] sm:$0xff] %vm982_vm8, %v939_v32 }
 0x1fe   : > { %v2238_v15 = vpack.c.bf16 %v1764_v33, %v1763_v53  ;;  %1482 = vrot.lane.b32.xlu1 %v2092_v30, %s2380_s8  ;;  %1480 = vrot.lane.b32.xlu0 %v2061_v41, %s2380_s8  ;;  %p2318_p2 = por %p2317_p1, %p2316_p0 }
 0x200   : > { %2240 = vmatpush3.bf16.xpose.msk.msra.mxu0 %vm3040_vm1, %v2238_v15  ;;  %v909_v13 = vpop.permute.xlu1 %908  ;;  %v907_v37 = vpop.permute.xlu0 %906  ;;  %p2319_p3 = pnand %p2318_p2, %p2312_p13 }
 0x201   : > { %994 = vst.msk [vmem:[#allocation2 + $0x58] sm:$0xff] %vm982_vm8, %v909_v13  ;;  %993 = vst.msk [vmem:[#allocation2 + $0x50] sm:$0xff] %vm982_vm8, %v907_v37 }
 0x202   : > { %1663 = vrot.lane.b32.xlu1 %v2122_v34, %s2381_s9  ;;  %1661 = vrot.lane.b32.xlu0 %v2121_v36, %s2381_s9 }
 0x204   : > { %v1134_v3 = vpop.permute.xlu1 %1133  ;;  %v1132_v1 = vpop.permute.xlu0 %1131 }
 0x205   : > { %1204 = vst.msk [vmem:[#allocation2 + $0xd8] sm:$0x7f] %vm1177_vm9, %v1134_v3 }
 0x206   : > { %1203 = vst.msk [vmem:[#allocation2 + $0xd0] sm:$0xff] %vm1175_vm10, %v1132_v1  ;;  %1791 = vperm.xlu0 %2308, %v1788_v40  }
 0x208   : > { %v1102_v42 = vpop.permute.xlu1 %1101  ;;  %v1100_v9 = vpop.permute.xlu0 %1099 }
 0x209   : > { %1188 = vst.msk [vmem:[#allocation2 + $0x58] sm:$0x7f] %vm1177_vm9, %v1102_v42 }
 0x20a   : > { %1187 = vst.msk [vmem:[#allocation2 + $0x50] sm:$0xff] %vm1175_vm10, %v1100_v9 }
 0x20c   : > { %v1325_v43 = vpop.permute.xlu1 %1324  ;;  %v1323_v44 = vpop.permute.xlu0 %1322 }
 0x20d   : > { %1389 = vst.msk [vmem:[#allocation2 + $0xd9] sm:$0x7f] %vm1362_vm11, %v1325_v43 }
 0x20e   : > { %1388 = vst.msk [vmem:[#allocation2 + $0xd1] sm:$0xff] %vm1360_vm12, %v1323_v44 }
 0x210   : > { %v1293_v49 = vpop.permute.xlu1 %1292  ;;  %v1291_v45 = vpop.permute.xlu0 %1290 }
 0x211   : > { %1373 = vst.msk [vmem:[#allocation2 + $0x59] sm:$0x7f] %vm1362_vm11, %v1293_v49 }
 0x212   : > { %1372 = vst.msk [vmem:[#allocation2 + $0x51] sm:$0xff] %vm1360_vm12, %v1291_v45 }
 0x214   : > { %v1507_v46 = vpop.permute.xlu1 %1506  ;;  %v1505_v48 = vpop.permute.xlu0 %1504 }
 0x215   : > { %1570 = vst.msk [vmem:[#allocation2 + $0xd8] sm:$0xff] %vm1542_vm13, %v1507_v46  ;;  %1569 = vst.msk [vmem:[#allocation2 + $0xd0] sm:$0xff] %vm1542_vm13, %v1505_v48 }
 0x218   : > { %v1475_v50 = vpop.permute.xlu1 %1474  ;;  %v1473_v52 = vpop.permute.xlu0 %1472 }
 0x219   : > { %1554 = vst.msk [vmem:[#allocation2 + $0x58] sm:$0xff] %vm1542_vm13, %v1475_v50  ;;  %1553 = vst.msk [vmem:[#allocation2 + $0x50] sm:$0xff] %vm1542_vm13, %v1473_v52 }
 0x21c   : > { %v1688_v55 = vpop.permute.xlu1 %1687  ;;  %v1686_v7 = vpop.permute.xlu0 %1685 }
 0x21d   : > { %1752 = vst.msk [vmem:[#allocation2 + $0xd8] sm:$0x7f] %vm1725_vm14, %v1688_v55 }
 0x21e   : > { %1751 = vst.msk [vmem:[#allocation2 + $0xd0] sm:$0xff] %vm1723_vm15, %v1686_v7 }
 0x220   : > { %v1656_v56 = vpop.permute.xlu1 %1655  ;;  %v1654_v8 = vpop.permute.xlu0 %1653 }
 0x221   : > { %1736 = vst.msk [vmem:[#allocation2 + $0x58] sm:$0x7f] %vm1725_vm14, %v1656_v56 }
 0x222   : > { %1735 = vst.msk [vmem:[#allocation2 + $0x50] sm:$0xff] %vm1723_vm15, %v1654_v8 }
 0x224   : > { %v751_v57 = vpop.permute.xlu1 %750  ;;  %v749_v58 = vpop.permute.xlu0 %748  ;;  %v1782_v35 = vld [vmem:[#allocation2 + $0xd8] sm:$0xff] }
 0x225   : > { %v1781_v59 = vld [vmem:[#allocation2 + $0xd0] sm:$0xff]  ;;  %819 = vst.msk [vmem:[#allocation2 + $0xe9] sm:$0x7f] %vm790_vm6, %v751_v57 }
 0x226   : > { %818 = vst.msk [vmem:[#allocation2 + $0xe1] sm:$0xff] %vm788_vm7, %v749_v58  ;;  %v2241_v12 = vpack.c.bf16 %v1782_v35, %v1781_v59 }
 0x228   : > { %2243 = vmatprep.subr.msk.bf16.mxu0 %vm3040_vm1, %v2241_v12  ;;  %v719_v4 = vpop.permute.xlu1 %718  ;;  %v717_v60 = vpop.permute.xlu0 %716  ;;  %v1766_v61 = vld [vmem:[#allocation2 + $0x58] sm:$0xff] }
 0x229   : > { %v1765_v2 = vld [vmem:[#allocation2 + $0x50] sm:$0xff]  ;;  %803 = vst.msk [vmem:[#allocation2 + $0x69] sm:$0x7f] %vm790_vm6, %v719_v4 }
 0x22a   : > { %802 = vst.msk [vmem:[#allocation2 + $0x61] sm:$0xff] %vm788_vm7, %v717_v60  ;;  %v2244_v14 = vpack.c.bf16 %v1766_v61, %v1765_v2 }
 0x22c   : > { %2246 = vmatpush3.bf16.xpose.msk.msra.mxu0 %vm3040_vm1, %v2244_v14  ;;  %v945_v39 = vpop.permute.xlu1 %944  ;;  %v943_v11 = vpop.permute.xlu0 %942 }
 0x22d   : > { %1012 = vst.msk [vmem:[#allocation2 + $0xe8] sm:$0xff] %vm982_vm8, %v945_v39  ;;  %1011 = vst.msk [vmem:[#allocation2 + $0xe0] sm:$0xff] %vm982_vm8, %v943_v11 }
 0x230   : > { %v913_v5 = vpop.permute.xlu1 %912  ;;  %v911_v62 = vpop.permute.xlu0 %910 }
 0x231   : > { %996 = vst.msk [vmem:[#allocation2 + $0x68] sm:$0xff] %vm982_vm8, %v913_v5  ;;  %995 = vst.msk [vmem:[#allocation2 + $0x60] sm:$0xff] %vm982_vm8, %v911_v62 }
 0x234   : > { %v1138_v63 = vpop.permute.xlu1 %1137  ;;  %v1136_v16 = vpop.permute.xlu0 %1135 }
 0x235   : > { %1206 = vst.msk [vmem:[#allocation2 + $0xe8] sm:$0x7f] %vm1177_vm9, %v1138_v63 }
 0x236   : > { %1205 = vst.msk [vmem:[#allocation2 + $0xe0] sm:$0xff] %vm1175_vm10, %v1136_v16 }
 0x238   : > { %v1106_v0 = vpop.permute.xlu1 %1105  ;;  %v1104_v10 = vpop.permute.xlu0 %1103 }
 0x239   : > { %1190 = vst.msk [vmem:[#allocation2 + $0x68] sm:$0x7f] %vm1177_vm9, %v1106_v0 }
 0x23a   : > { %1189 = vst.msk [vmem:[#allocation2 + $0x60] sm:$0xff] %vm1175_vm10, %v1104_v10 }
 0x23c   : > { %v1329_v51 = vpop.permute.xlu1 %1328  ;;  %v1327_v47 = vpop.permute.xlu0 %1326 }
 0x23d   : > { %1391 = vst.msk [vmem:[#allocation2 + $0xe9] sm:$0x7f] %vm1362_vm11, %v1329_v51 }
 0x23e   : > { %1390 = vst.msk [vmem:[#allocation2 + $0xe1] sm:$0xff] %vm1360_vm12, %v1327_v47 }
 0x240   : > { %v1297_v17 = vpop.permute.xlu1 %1296  ;;  %v1295_v19 = vpop.permute.xlu0 %1294 }
 0x241   : > { %1375 = vst.msk [vmem:[#allocation2 + $0x69] sm:$0x7f] %vm1362_vm11, %v1297_v17 }
 0x242   : > { %1374 = vst.msk [vmem:[#allocation2 + $0x61] sm:$0xff] %vm1360_vm12, %v1295_v19 }
 0x244   : > { %v1511_v20 = vpop.permute.xlu1 %1510  ;;  %v1509_v21 = vpop.permute.xlu0 %1508 }
 0x245   : > { %1572 = vst.msk [vmem:[#allocation2 + $0xe8] sm:$0xff] %vm1542_vm13, %v1511_v20  ;;  %1571 = vst.msk [vmem:[#allocation2 + $0xe0] sm:$0xff] %vm1542_vm13, %v1509_v21 }
 0x248   : > { %v1479_v6 = vpop.permute.xlu1 %1478  ;;  %v1477_v41 = vpop.permute.xlu0 %1476 }
 0x249   : > { %1556 = vst.msk [vmem:[#allocation2 + $0x68] sm:$0xff] %vm1542_vm13, %v1479_v6  ;;  %1555 = vst.msk [vmem:[#allocation2 + $0x60] sm:$0xff] %vm1542_vm13, %v1477_v41 }
 0x24c   : > { %v1692_v22 = vpop.permute.xlu1 %1691  ;;  %v1690_v23 = vpop.permute.xlu0 %1689 }
 0x24d   : > { %1754 = vst.msk [vmem:[#allocation2 + $0xe8] sm:$0x7f] %vm1725_vm14, %v1692_v22 }
 0x24e   : > { %1753 = vst.msk [vmem:[#allocation2 + $0xe0] sm:$0xff] %vm1723_vm15, %v1690_v23 }
 0x250   : > { %v1660_v24 = vpop.permute.xlu1 %1659  ;;  %v1658_v25 = vpop.permute.xlu0 %1657 }
 0x251   : > { %1738 = vst.msk [vmem:[#allocation2 + $0x68] sm:$0x7f] %vm1725_vm14, %v1660_v24 }
 0x252   : > { %1737 = vst.msk [vmem:[#allocation2 + $0x60] sm:$0xff] %vm1723_vm15, %v1658_v25 }
 0x254   : > { %v723_v26 = vpop.permute.xlu1 %722  ;;  %v721_v27 = vpop.permute.xlu0 %720  ;;  %v1784_v29 = vld [vmem:[#allocation2 + $0xe8] sm:$0xff] }
 0x255   : > { %v1783_v28 = vld [vmem:[#allocation2 + $0xe0] sm:$0xff]  ;;  %805 = vst.msk [vmem:[#allocation2 + $0x79] sm:$0x7f] %vm790_vm6, %v723_v26 }
 0x256   : > { %804 = vst.msk [vmem:[#allocation2 + $0x71] sm:$0xff] %vm788_vm7, %v721_v27  ;;  %v2247_v30 = vpack.c.bf16 %v1784_v29, %v1783_v28 }
 0x258   : > { %2249 = vmatprep.subr.msk.bf16.mxu0 %vm3040_vm1, %v2247_v30  ;;  %v917_v31 = vpop.permute.xlu1 %916  ;;  %v915_v32 = vpop.permute.xlu0 %914  ;;  %v1768_v33 = vld [vmem:[#allocation2 + $0x68] sm:$0xff] }
 0x259   : > { %v1767_v53 = vld [vmem:[#allocation2 + $0x60] sm:$0xff]  ;;  %998 = vst.msk [vmem:[#allocation2 + $0x78] sm:$0xff] %vm982_vm8, %v917_v31  ;;  %997 = vst.msk [vmem:[#allocation2 + $0x70] sm:$0xff] %vm982_vm8, %v915_v32 }
 0x25a   : > { %v2250_v15 = vpack.c.bf16 %v1768_v33, %v1767_v53 }
 0x25c   : > { %2252 = vmatpush3.bf16.xpose.msk.msra.mxu0 %vm3040_vm1, %v2250_v15  ;;  %v755_v34 = vpop.permute.xlu1 %754  ;;  %v753_v36 = vpop.permute.xlu0 %752 }
 0x25d   : > { %821 = vst.msk [vmem:[#allocation2 + $0xf9] sm:$0x7f] %vm790_vm6, %v755_v34 }
 0x25e   : > { %820 = vst.msk [vmem:[#allocation2 + $0xf1] sm:$0xff] %vm788_vm7, %v753_v36 }
 0x260   : > { %v1110_v13 = vpop.permute.xlu1 %1109  ;;  %v1108_v37 = vpop.permute.xlu0 %1107 }
 0x261   : > { %1192 = vst.msk [vmem:[#allocation2 + $0x78] sm:$0x7f] %vm1177_vm9, %v1110_v13 }
 0x262   : > { %1191 = vst.msk [vmem:[#allocation2 + $0x70] sm:$0xff] %vm1175_vm10, %v1108_v37 }
 0x264   : > { %v949_v3 = vpop.permute.xlu1 %948  ;;  %v947_v1 = vpop.permute.xlu0 %946 }
 0x265   : > { %1014 = vst.msk [vmem:[#allocation2 + $0xf8] sm:$0xff] %vm982_vm8, %v949_v3  ;;  %1013 = vst.msk [vmem:[#allocation2 + $0xf0] sm:$0xff] %vm982_vm8, %v947_v1 }
 0x268   : > { %v1301_v40 = vpop.permute.xlu1 %1300  ;;  %v1299_v18 = vpop.permute.xlu0 %1298 }
 0x269   : > { %1377 = vst.msk [vmem:[#allocation2 + $0x79] sm:$0x7f] %vm1362_vm11, %v1301_v40 }
 0x26a   : > { %1376 = vst.msk [vmem:[#allocation2 + $0x71] sm:$0xff] %vm1360_vm12, %v1299_v18 }
 0x26c   : > { %v1142_v42 = vpop.permute.xlu1 %1141  ;;  %v1140_v9 = vpop.permute.xlu0 %1139 }
 0x26d   : > { %1208 = vst.msk [vmem:[#allocation2 + $0xf8] sm:$0x7f] %vm1177_vm9, %v1142_v42 }
 0x26e   : > { %1207 = vst.msk [vmem:[#allocation2 + $0xf0] sm:$0xff] %vm1175_vm10, %v1140_v9 }
 0x270   : > { %v1483_v43 = vpop.permute.xlu1 %1482  ;;  %v1481_v44 = vpop.permute.xlu0 %1480 }
 0x271   : > { %1558 = vst.msk [vmem:[#allocation2 + $0x78] sm:$0xff] %vm1542_vm13, %v1483_v43  ;;  %1557 = vst.msk [vmem:[#allocation2 + $0x70] sm:$0xff] %vm1542_vm13, %v1481_v44 }
 0x274   : > { %v1664_v49 = vpop.permute.xlu1 %1663  ;;  %v1662_v45 = vpop.permute.xlu0 %1661  ;;  %v1786_v48 = vld [vmem:[#allocation2 + $0xf8] sm:$0xff] }
 0x275   : > { %v1785_v46 = vld [vmem:[#allocation2 + $0xf0] sm:$0xff]  ;;  %1740 = vst.msk [vmem:[#allocation2 + $0x78] sm:$0x7f] %vm1725_vm14, %v1664_v49 }
 0x276   : > { %1739 = vst.msk [vmem:[#allocation2 + $0x70] sm:$0xff] %vm1723_vm15, %v1662_v45  ;;  %v2253_v50 = vpack.c.bf16 %v1786_v48, %v1785_v46 }
 0x278   : > { %2255 = vmatprep.subr.msk.bf16.mxu0 %vm3040_vm1, %v2253_v50 }
 0x27c   : > { %v1770_v55 = vld [vmem:[#allocation2 + $0x78] sm:$0xff] }
 0x27d   : > { %v1769_v52 = vld [vmem:[#allocation2 + $0x70] sm:$0xff] }
 0x27e   : > { %v2256_v7 = vpack.c.bf16 %v1770_v55, %v1769_v52 }
 0x280   : > { %2258 = vmatpush3.bf16.xpose.msk.msra.mxu0 %vm3040_vm1, %v2256_v7 }
 0x285   : > { %v1792_v56 = vpop.permute.xlu0 %1791 }
 0x287   : > { %2210 = vmatmul.mubr.msk.f32.vlgmr.msra.gmra.mrb[0].mxu0 %vm169_vm0, %v3342_v38 }
 0x35a   : > { %v1959_v8 = vpop.f32.mrb[0].mxu0 }
 0x35b   : > { %v1960_v57 = vadd.f32 %v1959_v8, %v1792_v56  ;;  %v1961_v58 = vpop.f32.mrb[1].mxu0 }
 0x35c   : > { %v1962_v59 = vadd.f32 %v1961_v58, %v1792_v56 }
 0x35d   : > { %1964 = vst [vmem:[%s163_s26] sm:$0xff] %v1960_v57 }
 0x35e   : > { %1965 = vst [vmem:[%s163_s26 + $0x8] sm:$0xff] %v1962_v59 }
 0x35f   : > { %2322 = shalt.err (!%p2319_p3)
}
 0x360   : > { %s2323_s8 = scalar_lea.hbm %s3430_s30, 256  ;;  %s2327_s11 = scalar_lea.hbm %s3475_s3, 512 }
 0x361   : > { %p2324_p4 = scmp.ne.s32.totalorder %s3430_s30, %s2323_s8  ;;  %p2328_p9 = scmp.lt.u32.totalorder %s3430_s30, %s3475_s3 }
 0x362   : > { %p2329_p10 = scmp.lt.u32.totalorder %s2327_s11, %s2323_s8  ;;  %p2331_p12 = scmp.lt.u32.totalorder %s2323_s8, %s3430_s30 }
 0x363   : > { %p2325_p7 = pnand %p2324_p4, %p2442_p5 }
 0x364   : > { %p2330_p11 = por %p2329_p10, %p2328_p9 }
 0x365   : > { %p2326_p8 = pneg %p2325_p7 }
 0x366   : > { %p2332_p13 = por %p2331_p12, %p2330_p11 }
 0x368   : > { %p2333_p0 = pnand %p2332_p13, %p2326_p8 }
 0x36a   : > { %2336 = shalt.err (!%p2333_p0)
}
 0x36b   : > { %2259 = dma.vmem_to_hbm [thread:$0]  (%p2442_p5), %s3432_s27, 256, %s3430_s30, %s1967_s4  }
 0x36c PF: > { %p2265_p1 = scmp.ge.s32.totalorder %s2371_s15, 2  ;;  %s1993_s20 = sand.u32 1, %s2359_s12  }
 0x36d   : > { %s1994_s24 = scalar_lea.sflag [#allocation4], %s1993_s20 }
 0x36e   : > { %p2262_p2 = pnand %p2265_p1, %p2446_p6 }
 0x370   : > { %2354 = dma.done.wait (!%p2262_p2), %s1994_s24, 256  }
 0x371   : > { %2356 = vsyncadd (!%p2262_p2), %s1994_s24, 4294967040  ;;  %p13_p3 = scmp.ge.s32.totalorder %s2429_s18, 4   ;;  %s3480_s12 = smov %s2363_s13 }
 0x372   : > { %s3481_s13 = smov %s2367_s14  ;;  %s3482_s14 = smov %s2440_s21 }
 0x373   : > { %s3483_s15 = smov %s2429_s18  ;;  %15 = sbr.rel (!%p13_p3) target bundleno = 3 (0x3), region = 69 }
 0x37a   :  { %1999 = vsyncpa [#allocation4], 1 }
 0x37b   :  { %2001 = vsyncpa [#allocation4 + $0x1], 1 }

</bundles_post_ra>
